<compile_context>
chip_gen: v6e
topology: v6e:2x2x1
jax: 0.10.0
libtpu: 0.0.40
codegen_flags: <defaults>
</compile_context>

<pallas_src>
import functools
import math

import jax
import jax.numpy as jnp
from jax import lax
from jax.experimental import pallas as pl
from jax.experimental.pallas import tpu as pltpu


def _next_pow2(n):
    return 1 if n <= 1 else 1 << (n - 1).bit_length()


# --------------------------------------------------------------------------------------
# Fused kernel.  Packed lane layout: lane = ch * W + w  (L = Chp * W lanes), image rows
# on the sublane axis.  One grid step = one batch image.
# --------------------------------------------------------------------------------------
def _fused_kernel(x_ref, w1_ref, s1_ref, b1_ref, w2_ref, s2_ref, b2_ref,
                  w3_ref, s3_ref, b3_ref, o_ref, h1s_ref,
                  *, H, W, K, Cin, Chp, Cout):
    p = K // 2
    L = Chp * W

    # ---- stage 1: 1x1 conv + bn1 + relu6, all hidden channels at once ----
    acc = None
    for ci in range(Cin):
        # replicate the (H, W) input plane across the Chp lane segments
        xt = jnp.concatenate([x_ref[ci]] * Chp, axis=1)            # (H, L)
        term = xt * w1_ref[ci:ci + 1]                              # (H, L) * (1, L)
        acc = term if acc is None else acc + term
    h1 = jnp.clip(acc * s1_ref[...] + b1_ref[...], 0.0, 6.0)       # (H, L)

    # vertical conv padding = static zero halo rows in the VMEM scratch
    if p:
        h1s_ref[0:p, :] = jnp.zeros((p, L), jnp.float32)
        h1s_ref[p + H:p + H + p, :] = jnp.zeros((p, L), jnp.float32)
    h1s_ref[p:p + H, :] = h1

    # ---- stage 2: depthwise KxK conv + bn2 + relu6 ----
    # Horizontal taps: pltpu.roll along lanes; the per-W-segment boundary mask is folded
    # into the per-lane tap weights (w2_ref), so no selects are needed.
    acc2 = None
    for dy in range(K):
        rows = h1s_ref[dy:dy + H, :]                               # (H, L)
        for dx in range(K):
            if dx == p:
                shifted = rows
            else:
                shifted = pltpu.roll(rows, shift=(p - dx) % L, axis=1)
            term = shifted * w2_ref[dy * K + dx:dy * K + dx + 1]
            acc2 = term if acc2 is None else acc2 + term
    h2 = jnp.clip(acc2 * s2_ref[...] + b2_ref[...], 0.0, 6.0)      # (H, L)

    # ---- stage 3: 1x1 conv + bn3 + relu6 ----
    # Weighted log2(Chp) roll+add tree reduces the Chp lane segments; after the tree,
    # lanes [0, W) hold sum_ch h2[ch] * w3[co, ch].
    for co in range(Cout):
        t = h2 * w3_ref[co:co + 1]                                 # (H, L)
        seg = Chp
        while seg > 1:
            half = seg // 2
            t = t + pltpu.roll(t, shift=(L - half * W) % L, axis=1)
            seg = half
        y = t[:, :W]                                               # (H, W)
        o_ref[co, :, :] = jnp.clip(y * s3_ref[co] + b3_ref[co], 0.0, 6.0
                                   ).astype(o_ref.dtype)


def _fused_call(x, lane_params, s3, b3, *, H, W, K, Cin, Chp, Cout):
    (w1_lane, s1_lane, b1_lane, w2_lane, s2_lane, b2_lane, w3_lane) = lane_params
    N = x.shape[0]
    L = Chp * W
    p = K // 2
    kern = functools.partial(_fused_kernel, H=H, W=W, K=K,
                             Cin=Cin, Chp=Chp, Cout=Cout)

    def vmem(shape):
        return pl.BlockSpec(shape, lambda b: (0,) * len(shape))

    return pl.pallas_call(
        kern,
        out_shape=jax.ShapeDtypeStruct((N, Cout, H, W), jnp.float32),
        grid_spec=pltpu.PrefetchScalarGridSpec(
            num_scalar_prefetch=0,
            grid=(N,),
            in_specs=[
                pl.BlockSpec((None, Cin, H, W), lambda b: (b, 0, 0, 0)),   # x
                vmem((Cin, L)),                                            # w1_lane
                vmem((1, L)),                                              # s1_lane
                vmem((1, L)),                                              # b1_lane
                vmem((K * K, L)),                                          # w2_lane
                vmem((1, L)),                                              # s2_lane
                vmem((1, L)),                                              # b2_lane
                vmem((Cout, L)),                                           # w3_lane
                pl.BlockSpec(memory_space=pltpu.MemorySpace.SMEM),         # s3
                pl.BlockSpec(memory_space=pltpu.MemorySpace.SMEM),         # b3
            ],
            out_specs=pl.BlockSpec((None, Cout, H, W), lambda b: (b, 0, 0, 0)),
            scratch_shapes=[pltpu.VMEM((H + 2 * p, L), jnp.float32)],
        ),
        compiler_params=pltpu.CompilerParams(
            dimension_semantics=("parallel",)),
    )(x, w1_lane, s1_lane, b1_lane, w2_lane, s2_lane, b2_lane, w3_lane, s3, b3)


# --------------------------------------------------------------------------------------
# Wrapper: build per-lane parameter vectors (lane = ch*W + w), call the fused kernel.
# --------------------------------------------------------------------------------------
def _pack_params(params, W):
    w1 = params['w1'].astype(jnp.float32)                    # (Ch, Cin)
    w2 = params['w2'].astype(jnp.float32)                    # (Ch, K, K)
    w3 = params['w3'].astype(jnp.float32)                    # (Cout, Ch)
    Ch, Cin = w1.shape
    K = w2.shape[-1]
    Cout = w3.shape[0]
    p = K // 2
    Chp = _next_pow2(Ch)                                     # pow2 so the lane tree works
    L = Chp * W

    def seg(v):                                              # (Ch,) -> (L,), lane = ch*W+w
        if Chp > Ch:
            v = jnp.concatenate([v, jnp.zeros((Chp - Ch,), v.dtype)])
        return jnp.repeat(v, W)

    w1_lane = jnp.stack([seg(w1[:, ci]) for ci in range(Cin)])          # (Cin, L)
    s1_lane = seg(params['s1'].astype(jnp.float32))[None]               # (1, L)
    b1_lane = seg(params['b1'].astype(jnp.float32))[None]

    w_idx = jnp.arange(W)
    rows = []
    for dy in range(K):
        for dx in range(K):
            # mask lanes whose horizontal source w + dx - p falls outside [0, W)
            valid = ((w_idx + dx - p >= 0) & (w_idx + dx - p < W)).astype(jnp.float32)
            tap = w2[:, dy, dx]
            if Chp > Ch:
                tap = jnp.concatenate([tap, jnp.zeros((Chp - Ch,), tap.dtype)])
            rows.append((tap[:, None] * valid[None, :]).reshape(L))
    w2_lane = jnp.stack(rows)                                           # (K*K, L)
    s2_lane = seg(params['s2'].astype(jnp.float32))[None]
    b2_lane = seg(params['b2'].astype(jnp.float32))[None]

    w3_lane = jnp.stack([seg(w3[co]) for co in range(Cout)])            # (Cout, L)
    return (w1_lane, s1_lane, b1_lane, w2_lane, s2_lane, b2_lane, w3_lane), Chp


@jax.jit
def skip_linear_block(x_nchw, params):
    N, Cin, H, W = x_nchw.shape
    K = params['w2'].shape[-1]
    Cout = params['w3'].shape[0]
    lane_params, Chp = _pack_params(params, W)
    return _fused_call(x_nchw.astype(jnp.float32), lane_params,
                       params['s3'].astype(jnp.float32),
                       params['b3'].astype(jnp.float32),
                       H=H, W=W, K=K, Cin=Cin, Chp=Chp, Cout=Cout)


def init_params(key, in_planes, out_planes, kernel_size=3, expansion=4):
    assert in_planes == out_planes
    hidden = round(in_planes * expansion)
    ks = jax.random.split(key, 9)
    eps = 1e-5

    def bn_fold(kg, kb, c):
        gamma = 1.0 + 0.1 * jax.random.normal(kg, (c,), jnp.float32)
        beta = 0.1 * jax.random.normal(kb, (c,), jnp.float32)
        running_mean = jnp.zeros((c,), jnp.float32)
        running_var = jnp.ones((c,), jnp.float32)
        scale = gamma / jnp.sqrt(running_var + eps)
        bias = beta - running_mean * scale
        return scale, bias

    # conv1: PyTorch (hidden, in, 1, 1) -> (hidden, in)
    w1 = jax.random.normal(ks[0], (hidden, in_planes), jnp.float32) / math.sqrt(in_planes)
    s1, b1 = bn_fold(ks[1], ks[2], hidden)
    # conv2: PyTorch depthwise (hidden, 1, K, K) -> (hidden, K, K)
    w2 = jax.random.normal(ks[3], (hidden, kernel_size, kernel_size), jnp.float32) / float(
        kernel_size * kernel_size)
    s2, b2 = bn_fold(ks[4], ks[5], hidden)
    # conv3: PyTorch (out, hidden, 1, 1) -> (out, hidden)
    w3 = jax.random.normal(ks[6], (out_planes, hidden), jnp.float32) / math.sqrt(hidden)
    s3, b3 = bn_fold(ks[7], ks[8], out_planes)

    return dict(w1=w1, s1=s1, b1=b1, w2=w2, s2=s2, b2=b2, w3=w3, s3=s3, b3=b3)


# --------------------------------------------------------------------------------------
# Pure-JAX reference (correctness check only)
# --------------------------------------------------------------------------------------
def reference(x_nchw, params):
    x = jnp.transpose(x_nchw, (0, 2, 3, 1)).astype(jnp.float32)   # NHWC
    Ch, Cin = params['w1'].shape
    Cout = params['w3'].shape[0]
    K = params['w2'].shape[1]
    dn = lax.conv_dimension_numbers(x.shape, (1, 1, 1, 1), ('NHWC', 'HWIO', 'NHWC'))
    relu6 = lambda v: jnp.clip(v, 0.0, 6.0)
    prec = lax.Precision.HIGHEST

    w1 = jnp.transpose(params['w1'])[None, None]                  # (1,1,Cin,Ch)
    h = lax.conv_general_dilated(x, w1, (1, 1), 'VALID', dimension_numbers=dn,
                                 precision=prec)
    h = relu6(h * params['s1'] + params['b1'])

    w2 = jnp.transpose(params['w2'], (1, 2, 0))[:, :, None, :]    # (K,K,1,Ch)
    h = lax.conv_general_dilated(h, w2, (1, 1), [(K // 2, K // 2)] * 2,
                                 dimension_numbers=dn, feature_group_count=Ch,
                                 precision=prec)
    h = relu6(h * params['s2'] + params['b2'])

    w3 = jnp.transpose(params['w3'])[None, None]                  # (1,1,Ch,Cout)
    h = lax.conv_general_dilated(h, w3, (1, 1), 'VALID', dimension_numbers=dn,
                                 precision=prec)
    h = relu6(h * params['s3'] + params['b3'])
    return jnp.transpose(h, (0, 3, 1, 2))


if __name__ == "__main__":
    key = jax.random.PRNGKey(0)
    k_x, k_p = jax.random.split(key)

    N, C, H, W = 2, 4, 16, 16      # in_planes == out_planes == 4, expansion=4 -> hidden=16
    x = jax.random.normal(k_x, (N, C, H, W), jnp.float32)
    params = init_params(k_p, in_planes=C, out_planes=C, kernel_size=3, expansion=4)

    out = jax.block_until_ready(skip_linear_block(x, params))
    ref = jax.block_until_ready(reference(x, params))

    assert out.shape == (N, C, H, W), out.shape
    err = float(jnp.max(jnp.abs(out - ref)))
    assert err < 1e-4, err

    print("KERNEL_OK")
</pallas_src>

<mosaic_0001>
module attributes {stable_mosaic.version = 11 : i64} {
  func.func @_fused_kernel(%arg0: i32, %arg1: memref<1x4x16x16xf32, #tpu.memory_space<vmem>>, %arg2: memref<4x256xf32, #tpu.memory_space<vmem>>, %arg3: memref<1x256xf32, #tpu.memory_space<vmem>>, %arg4: memref<1x256xf32, #tpu.memory_space<vmem>>, %arg5: memref<9x256xf32, #tpu.memory_space<vmem>>, %arg6: memref<1x256xf32, #tpu.memory_space<vmem>>, %arg7: memref<1x256xf32, #tpu.memory_space<vmem>>, %arg8: memref<4x256xf32, #tpu.memory_space<vmem>>, %arg9: memref<4xf32, #tpu.memory_space<smem>>, %arg10: memref<4xf32, #tpu.memory_space<smem>>, %arg11: memref<1x4x16x16xf32, #tpu.memory_space<vmem>>, %arg12: memref<18x256xf32, #tpu.memory_space<vmem>>) attributes {dimension_semantics = [#tpu.dimension_semantics<parallel>], iteration_bounds = array<i64: 2>, scalar_prefetch = 0 : i64, scratch_operands = 1 : i64, tpu.core_type = #tpu.core_type<tc>, window_params = [{transform_indices = @transform_0, window_bounds = array<i64: 1, 4, 16, 16>}, {pipeline_mode = #tpu.pipeline_mode<synchronous>, transform_indices = @transform_1, window_bounds = array<i64: 4, 256>}, {pipeline_mode = #tpu.pipeline_mode<synchronous>, transform_indices = @transform_2, window_bounds = array<i64: 1, 256>}, {pipeline_mode = #tpu.pipeline_mode<synchronous>, transform_indices = @transform_3, window_bounds = array<i64: 1, 256>}, {pipeline_mode = #tpu.pipeline_mode<synchronous>, transform_indices = @transform_4, window_bounds = array<i64: 9, 256>}, {pipeline_mode = #tpu.pipeline_mode<synchronous>, transform_indices = @transform_5, window_bounds = array<i64: 1, 256>}, {pipeline_mode = #tpu.pipeline_mode<synchronous>, transform_indices = @transform_6, window_bounds = array<i64: 1, 256>}, {pipeline_mode = #tpu.pipeline_mode<synchronous>, transform_indices = @transform_7, window_bounds = array<i64: 4, 256>}, {transform_indices = @transform_8, window_bounds = array<i64: 4>}, {transform_indices = @transform_9, window_bounds = array<i64: 4>}, {transform_indices = @transform_10, window_bounds = array<i64: 1, 4, 16, 16>}]} {
    %c0 = arith.constant 0 : index
    %c0_0 = arith.constant 0 : index
    %c0_1 = arith.constant 0 : index
    %c0_2 = arith.constant 0 : index
    %0 = vector.load %arg1[%c0, %c0_0, %c0_1, %c0_2] : memref<1x4x16x16xf32, #tpu.memory_space<vmem>>, vector<1x1x16x16xf32>
    %1 = vector.shape_cast %0 : vector<1x1x16x16xf32> to vector<16x16xf32>
    %2 = tpu.concatenate %1, %1, %1, %1, %1, %1, %1, %1, %1, %1, %1, %1, %1, %1, %1, %1 in 1 : vector<16x16xf32>, vector<16x16xf32>, vector<16x16xf32>, vector<16x16xf32>, vector<16x16xf32>, vector<16x16xf32>, vector<16x16xf32>, vector<16x16xf32>, vector<16x16xf32>, vector<16x16xf32>, vector<16x16xf32>, vector<16x16xf32>, vector<16x16xf32>, vector<16x16xf32>, vector<16x16xf32>, vector<16x16xf32> -> vector<16x256xf32>
    %c0_3 = arith.constant 0 : index
    %c0_4 = arith.constant 0 : index
    %3 = vector.load %arg2[%c0_3, %c0_4] : memref<4x256xf32, #tpu.memory_space<vmem>>, vector<1x256xf32>
    %4 = vector.broadcast %3 : vector<1x256xf32> to vector<16x256xf32>
    %5 = arith.mulf %2, %4 : vector<16x256xf32>
    %c0_5 = arith.constant 0 : index
    %c1 = arith.constant 1 : index
    %c0_6 = arith.constant 0 : index
    %c0_7 = arith.constant 0 : index
    %6 = vector.load %arg1[%c0_5, %c1, %c0_6, %c0_7] : memref<1x4x16x16xf32, #tpu.memory_space<vmem>>, vector<1x1x16x16xf32>
    %7 = vector.shape_cast %6 : vector<1x1x16x16xf32> to vector<16x16xf32>
    %8 = tpu.concatenate %7, %7, %7, %7, %7, %7, %7, %7, %7, %7, %7, %7, %7, %7, %7, %7 in 1 : vector<16x16xf32>, vector<16x16xf32>, vector<16x16xf32>, vector<16x16xf32>, vector<16x16xf32>, vector<16x16xf32>, vector<16x16xf32>, vector<16x16xf32>, vector<16x16xf32>, vector<16x16xf32>, vector<16x16xf32>, vector<16x16xf32>, vector<16x16xf32>, vector<16x16xf32>, vector<16x16xf32>, vector<16x16xf32> -> vector<16x256xf32>
    %c1_8 = arith.constant 1 : index
    %c0_9 = arith.constant 0 : index
    %9 = vector.load %arg2[%c1_8, %c0_9] : memref<4x256xf32, #tpu.memory_space<vmem>>, vector<1x256xf32>
    %10 = vector.broadcast %9 : vector<1x256xf32> to vector<16x256xf32>
    %11 = arith.mulf %8, %10 : vector<16x256xf32>
    %12 = arith.addf %5, %11 : vector<16x256xf32>
    %c0_10 = arith.constant 0 : index
    %c2 = arith.constant 2 : index
    %c0_11 = arith.constant 0 : index
    %c0_12 = arith.constant 0 : index
    %13 = vector.load %arg1[%c0_10, %c2, %c0_11, %c0_12] : memref<1x4x16x16xf32, #tpu.memory_space<vmem>>, vector<1x1x16x16xf32>
    %14 = vector.shape_cast %13 : vector<1x1x16x16xf32> to vector<16x16xf32>
    %15 = tpu.concatenate %14, %14, %14, %14, %14, %14, %14, %14, %14, %14, %14, %14, %14, %14, %14, %14 in 1 : vector<16x16xf32>, vector<16x16xf32>, vector<16x16xf32>, vector<16x16xf32>, vector<16x16xf32>, vector<16x16xf32>, vector<16x16xf32>, vector<16x16xf32>, vector<16x16xf32>, vector<16x16xf32>, vector<16x16xf32>, vector<16x16xf32>, vector<16x16xf32>, vector<16x16xf32>, vector<16x16xf32>, vector<16x16xf32> -> vector<16x256xf32>
    %c2_13 = arith.constant 2 : index
    %c0_14 = arith.constant 0 : index
    %16 = vector.load %arg2[%c2_13, %c0_14] : memref<4x256xf32, #tpu.memory_space<vmem>>, vector<1x256xf32>
    %17 = vector.broadcast %16 : vector<1x256xf32> to vector<16x256xf32>
    %18 = arith.mulf %15, %17 : vector<16x256xf32>
    %19 = arith.addf %12, %18 : vector<16x256xf32>
    %c0_15 = arith.constant 0 : index
    %c3 = arith.constant 3 : index
    %c0_16 = arith.constant 0 : index
    %c0_17 = arith.constant 0 : index
    %20 = vector.load %arg1[%c0_15, %c3, %c0_16, %c0_17] : memref<1x4x16x16xf32, #tpu.memory_space<vmem>>, vector<1x1x16x16xf32>
    %21 = vector.shape_cast %20 : vector<1x1x16x16xf32> to vector<16x16xf32>
    %22 = tpu.concatenate %21, %21, %21, %21, %21, %21, %21, %21, %21, %21, %21, %21, %21, %21, %21, %21 in 1 : vector<16x16xf32>, vector<16x16xf32>, vector<16x16xf32>, vector<16x16xf32>, vector<16x16xf32>, vector<16x16xf32>, vector<16x16xf32>, vector<16x16xf32>, vector<16x16xf32>, vector<16x16xf32>, vector<16x16xf32>, vector<16x16xf32>, vector<16x16xf32>, vector<16x16xf32>, vector<16x16xf32>, vector<16x16xf32> -> vector<16x256xf32>
    %c3_18 = arith.constant 3 : index
    %c0_19 = arith.constant 0 : index
    %23 = vector.load %arg2[%c3_18, %c0_19] : memref<4x256xf32, #tpu.memory_space<vmem>>, vector<1x256xf32>
    %24 = vector.broadcast %23 : vector<1x256xf32> to vector<16x256xf32>
    %25 = arith.mulf %22, %24 : vector<16x256xf32>
    %26 = arith.addf %19, %25 : vector<16x256xf32>
    %c0_20 = arith.constant 0 : index
    %c0_21 = arith.constant 0 : index
    %27 = vector.load %arg3[%c0_20, %c0_21] : memref<1x256xf32, #tpu.memory_space<vmem>>, vector<1x256xf32>
    %28 = vector.broadcast %27 : vector<1x256xf32> to vector<16x256xf32>
    %29 = arith.mulf %26, %28 : vector<16x256xf32>
    %c0_22 = arith.constant 0 : index
    %c0_23 = arith.constant 0 : index
    %30 = vector.load %arg4[%c0_22, %c0_23] : memref<1x256xf32, #tpu.memory_space<vmem>>, vector<1x256xf32>
    %31 = vector.broadcast %30 : vector<1x256xf32> to vector<16x256xf32>
    %32 = arith.addf %29, %31 : vector<16x256xf32>
    %cst = arith.constant 0.000000e+00 : f32
    %cst_24 = arith.constant 6.000000e+00 : f32
    %33 = vector.broadcast %cst : f32 to vector<16x256xf32>
    %34 = arith.maximumf %33, %32 : vector<16x256xf32>
    %35 = vector.broadcast %cst_24 : f32 to vector<16x256xf32>
    %36 = arith.minimumf %35, %34 : vector<16x256xf32>
    %cst_25 = arith.constant 0.000000e+00 : f32
    %37 = vector.broadcast %cst_25 : f32 to vector<1x256xf32>
    %c0_26 = arith.constant 0 : index
    %c0_27 = arith.constant 0 : index
    %38 = vector.load %arg12[%c0_26, %c0_27] : memref<18x256xf32, #tpu.memory_space<vmem>>, vector<1x256xf32>
    tpu.vector_store %arg12[%c0_26, %c0_27], %37 {strides = array<i32>} : memref<18x256xf32, #tpu.memory_space<vmem>>, vector<1x256xf32>,
    %cst_28 = arith.constant 0.000000e+00 : f32
    %39 = vector.broadcast %cst_28 : f32 to vector<1x256xf32>
    %c17 = arith.constant 17 : index
    %c0_29 = arith.constant 0 : index
    %40 = vector.load %arg12[%c17, %c0_29] : memref<18x256xf32, #tpu.memory_space<vmem>>, vector<1x256xf32>
    tpu.vector_store %arg12[%c17, %c0_29], %39 {strides = array<i32>} : memref<18x256xf32, #tpu.memory_space<vmem>>, vector<1x256xf32>,
    %c1_30 = arith.constant 1 : index
    %c0_31 = arith.constant 0 : index
    %41 = vector.load %arg12[%c1_30, %c0_31] : memref<18x256xf32, #tpu.memory_space<vmem>>, vector<16x256xf32>
    tpu.vector_store %arg12[%c1_30, %c0_31], %36 {strides = array<i32>} : memref<18x256xf32, #tpu.memory_space<vmem>>, vector<16x256xf32>,
    %c0_32 = arith.constant 0 : index
    %c0_33 = arith.constant 0 : index
    %42 = vector.load %arg12[%c0_32, %c0_33] : memref<18x256xf32, #tpu.memory_space<vmem>>, vector<16x256xf32>
    %c1_i32 = arith.constant 1 : i32
    %43 = tpu.dynamic_rotate %42 by %c1_i32 dim 1 : vector<16x256xf32>, i32 -> vector<16x256xf32>
    %c0_34 = arith.constant 0 : index
    %c0_35 = arith.constant 0 : index
    %44 = vector.load %arg5[%c0_34, %c0_35] : memref<9x256xf32, #tpu.memory_space<vmem>>, vector<1x256xf32>
    %45 = vector.broadcast %44 : vector<1x256xf32> to vector<16x256xf32>
    %46 = arith.mulf %43, %45 : vector<16x256xf32>
    %c1_36 = arith.constant 1 : index
    %c0_37 = arith.constant 0 : index
    %47 = vector.load %arg5[%c1_36, %c0_37] : memref<9x256xf32, #tpu.memory_space<vmem>>, vector<1x256xf32>
    %48 = vector.broadcast %47 : vector<1x256xf32> to vector<16x256xf32>
    %49 = arith.mulf %42, %48 : vector<16x256xf32>
    %50 = arith.addf %46, %49 : vector<16x256xf32>
    %c255_i32 = arith.constant 255 : i32
    %51 = tpu.dynamic_rotate %42 by %c255_i32 dim 1 : vector<16x256xf32>, i32 -> vector<16x256xf32>
    %c2_38 = arith.constant 2 : index
    %c0_39 = arith.constant 0 : index
    %52 = vector.load %arg5[%c2_38, %c0_39] : memref<9x256xf32, #tpu.memory_space<vmem>>, vector<1x256xf32>
    %53 = vector.broadcast %52 : vector<1x256xf32> to vector<16x256xf32>
    %54 = arith.mulf %51, %53 : vector<16x256xf32>
    %55 = arith.addf %50, %54 : vector<16x256xf32>
    %c1_40 = arith.constant 1 : index
    %c0_41 = arith.constant 0 : index
    %56 = vector.load %arg12[%c1_40, %c0_41] : memref<18x256xf32, #tpu.memory_space<vmem>>, vector<16x256xf32>
    %c1_i32_42 = arith.constant 1 : i32
    %57 = tpu.dynamic_rotate %56 by %c1_i32_42 dim 1 : vector<16x256xf32>, i32 -> vector<16x256xf32>
    %c3_43 = arith.constant 3 : index
    %c0_44 = arith.constant 0 : index
    %58 = vector.load %arg5[%c3_43, %c0_44] : memref<9x256xf32, #tpu.memory_space<vmem>>, vector<1x256xf32>
    %59 = vector.broadcast %58 : vector<1x256xf32> to vector<16x256xf32>
    %60 = arith.mulf %57, %59 : vector<16x256xf32>
    %61 = arith.addf %55, %60 : vector<16x256xf32>
    %c4 = arith.constant 4 : index
    %c0_45 = arith.constant 0 : index
    %62 = vector.load %arg5[%c4, %c0_45] : memref<9x256xf32, #tpu.memory_space<vmem>>, vector<1x256xf32>
    %63 = vector.broadcast %62 : vector<1x256xf32> to vector<16x256xf32>
    %64 = arith.mulf %56, %63 : vector<16x256xf32>
    %65 = arith.addf %61, %64 : vector<16x256xf32>
    %c255_i32_46 = arith.constant 255 : i32
    %66 = tpu.dynamic_rotate %56 by %c255_i32_46 dim 1 : vector<16x256xf32>, i32 -> vector<16x256xf32>
    %c5 = arith.constant 5 : index
    %c0_47 = arith.constant 0 : index
    %67 = vector.load %arg5[%c5, %c0_47] : memref<9x256xf32, #tpu.memory_space<vmem>>, vector<1x256xf32>
    %68 = vector.broadcast %67 : vector<1x256xf32> to vector<16x256xf32>
    %69 = arith.mulf %66, %68 : vector<16x256xf32>
    %70 = arith.addf %65, %69 : vector<16x256xf32>
    %c2_48 = arith.constant 2 : index
    %c0_49 = arith.constant 0 : index
    %71 = vector.load %arg12[%c2_48, %c0_49] : memref<18x256xf32, #tpu.memory_space<vmem>>, vector<16x256xf32>
    %c1_i32_50 = arith.constant 1 : i32
    %72 = tpu.dynamic_rotate %71 by %c1_i32_50 dim 1 : vector<16x256xf32>, i32 -> vector<16x256xf32>
    %c6 = arith.constant 6 : index
    %c0_51 = arith.constant 0 : index
    %73 = vector.load %arg5[%c6, %c0_51] : memref<9x256xf32, #tpu.memory_space<vmem>>, vector<1x256xf32>
    %74 = vector.broadcast %73 : vector<1x256xf32> to vector<16x256xf32>
    %75 = arith.mulf %72, %74 : vector<16x256xf32>
    %76 = arith.addf %70, %75 : vector<16x256xf32>
    %c7 = arith.constant 7 : index
    %c0_52 = arith.constant 0 : index
    %77 = vector.load %arg5[%c7, %c0_52] : memref<9x256xf32, #tpu.memory_space<vmem>>, vector<1x256xf32>
    %78 = vector.broadcast %77 : vector<1x256xf32> to vector<16x256xf32>
    %79 = arith.mulf %71, %78 : vector<16x256xf32>
    %80 = arith.addf %76, %79 : vector<16x256xf32>
    %c255_i32_53 = arith.constant 255 : i32
    %81 = tpu.dynamic_rotate %71 by %c255_i32_53 dim 1 : vector<16x256xf32>, i32 -> vector<16x256xf32>
    %c8 = arith.constant 8 : index
    %c0_54 = arith.constant 0 : index
    %82 = vector.load %arg5[%c8, %c0_54] : memref<9x256xf32, #tpu.memory_space<vmem>>, vector<1x256xf32>
    %83 = vector.broadcast %82 : vector<1x256xf32> to vector<16x256xf32>
    %84 = arith.mulf %81, %83 : vector<16x256xf32>
    %85 = arith.addf %80, %84 : vector<16x256xf32>
    %c0_55 = arith.constant 0 : index
    %c0_56 = arith.constant 0 : index
    %86 = vector.load %arg6[%c0_55, %c0_56] : memref<1x256xf32, #tpu.memory_space<vmem>>, vector<1x256xf32>
    %87 = vector.broadcast %86 : vector<1x256xf32> to vector<16x256xf32>
    %88 = arith.mulf %85, %87 : vector<16x256xf32>
    %c0_57 = arith.constant 0 : index
    %c0_58 = arith.constant 0 : index
    %89 = vector.load %arg7[%c0_57, %c0_58] : memref<1x256xf32, #tpu.memory_space<vmem>>, vector<1x256xf32>
    %90 = vector.broadcast %89 : vector<1x256xf32> to vector<16x256xf32>
    %91 = arith.addf %88, %90 : vector<16x256xf32>
    %cst_59 = arith.constant 0.000000e+00 : f32
    %cst_60 = arith.constant 6.000000e+00 : f32
    %92 = vector.broadcast %cst_59 : f32 to vector<16x256xf32>
    %93 = arith.maximumf %92, %91 : vector<16x256xf32>
    %94 = vector.broadcast %cst_60 : f32 to vector<16x256xf32>
    %95 = arith.minimumf %94, %93 : vector<16x256xf32>
    %c0_61 = arith.constant 0 : index
    %c0_62 = arith.constant 0 : index
    %96 = vector.load %arg8[%c0_61, %c0_62] : memref<4x256xf32, #tpu.memory_space<vmem>>, vector<1x256xf32>
    %97 = vector.broadcast %96 : vector<1x256xf32> to vector<16x256xf32>
    %98 = arith.mulf %95, %97 : vector<16x256xf32>
    %c128_i32 = arith.constant 128 : i32
    %99 = tpu.dynamic_rotate %98 by %c128_i32 dim 1 : vector<16x256xf32>, i32 -> vector<16x256xf32>
    %100 = arith.addf %98, %99 : vector<16x256xf32>
    %c192_i32 = arith.constant 192 : i32
    %101 = tpu.dynamic_rotate %100 by %c192_i32 dim 1 : vector<16x256xf32>, i32 -> vector<16x256xf32>
    %102 = arith.addf %100, %101 : vector<16x256xf32>
    %c224_i32 = arith.constant 224 : i32
    %103 = tpu.dynamic_rotate %102 by %c224_i32 dim 1 : vector<16x256xf32>, i32 -> vector<16x256xf32>
    %104 = arith.addf %102, %103 : vector<16x256xf32>
    %c240_i32 = arith.constant 240 : i32
    %105 = tpu.dynamic_rotate %104 by %c240_i32 dim 1 : vector<16x256xf32>, i32 -> vector<16x256xf32>
    %106 = arith.addf %104, %105 : vector<16x256xf32>
    %107 = vector.extract_strided_slice %106 {offsets = [0, 0], sizes = [16, 16], strides = [1, 1]} : vector<16x256xf32> to vector<16x16xf32>
    %c0_63 = arith.constant 0 : index
    %108 = memref.load %arg9[%c0_63] : memref<4xf32, #tpu.memory_space<smem>>
    %109 = vector.broadcast %108 : f32 to vector<16x16xf32>
    %110 = arith.mulf %107, %109 : vector<16x16xf32>
    %c0_64 = arith.constant 0 : index
    %111 = memref.load %arg10[%c0_64] : memref<4xf32, #tpu.memory_space<smem>>
    %112 = vector.broadcast %111 : f32 to vector<16x16xf32>
    %113 = arith.addf %110, %112 : vector<16x16xf32>
    %cst_65 = arith.constant 0.000000e+00 : f32
    %cst_66 = arith.constant 6.000000e+00 : f32
    %114 = vector.broadcast %cst_65 : f32 to vector<16x16xf32>
    %115 = arith.maximumf %114, %113 : vector<16x16xf32>
    %116 = vector.broadcast %cst_66 : f32 to vector<16x16xf32>
    %117 = arith.minimumf %116, %115 : vector<16x16xf32>
    %c0_67 = arith.constant 0 : index
    %c0_68 = arith.constant 0 : index
    %c0_69 = arith.constant 0 : index
    %c0_70 = arith.constant 0 : index
    %118 = vector.load %arg11[%c0_67, %c0_68, %c0_69, %c0_70] : memref<1x4x16x16xf32, #tpu.memory_space<vmem>>, vector<1x1x16x16xf32>
    %119 = vector.shape_cast %118 : vector<1x1x16x16xf32> to vector<16x16xf32>
    %120 = vector.shape_cast %117 : vector<16x16xf32> to vector<1x1x16x16xf32>
    tpu.vector_store %arg11[%c0_67, %c0_68, %c0_69, %c0_70], %120 {strides = array<i32>} : memref<1x4x16x16xf32, #tpu.memory_space<vmem>>, vector<1x1x16x16xf32>,
    %c1_71 = arith.constant 1 : index
    %c0_72 = arith.constant 0 : index
    %121 = vector.load %arg8[%c1_71, %c0_72] : memref<4x256xf32, #tpu.memory_space<vmem>>, vector<1x256xf32>
    %122 = vector.broadcast %121 : vector<1x256xf32> to vector<16x256xf32>
    %123 = arith.mulf %95, %122 : vector<16x256xf32>
    %c128_i32_73 = arith.constant 128 : i32
    %124 = tpu.dynamic_rotate %123 by %c128_i32_73 dim 1 : vector<16x256xf32>, i32 -> vector<16x256xf32>
    %125 = arith.addf %123, %124 : vector<16x256xf32>
    %c192_i32_74 = arith.constant 192 : i32
    %126 = tpu.dynamic_rotate %125 by %c192_i32_74 dim 1 : vector<16x256xf32>, i32 -> vector<16x256xf32>
    %127 = arith.addf %125, %126 : vector<16x256xf32>
    %c224_i32_75 = arith.constant 224 : i32
    %128 = tpu.dynamic_rotate %127 by %c224_i32_75 dim 1 : vector<16x256xf32>, i32 -> vector<16x256xf32>
    %129 = arith.addf %127, %128 : vector<16x256xf32>
    %c240_i32_76 = arith.constant 240 : i32
    %130 = tpu.dynamic_rotate %129 by %c240_i32_76 dim 1 : vector<16x256xf32>, i32 -> vector<16x256xf32>
    %131 = arith.addf %129, %130 : vector<16x256xf32>
    %132 = vector.extract_strided_slice %131 {offsets = [0, 0], sizes = [16, 16], strides = [1, 1]} : vector<16x256xf32> to vector<16x16xf32>
    %c1_77 = arith.constant 1 : index
    %133 = memref.load %arg9[%c1_77] : memref<4xf32, #tpu.memory_space<smem>>
    %134 = vector.broadcast %133 : f32 to vector<16x16xf32>
    %135 = arith.mulf %132, %134 : vector<16x16xf32>
    %c1_78 = arith.constant 1 : index
    %136 = memref.load %arg10[%c1_78] : memref<4xf32, #tpu.memory_space<smem>>
    %137 = vector.broadcast %136 : f32 to vector<16x16xf32>
    %138 = arith.addf %135, %137 : vector<16x16xf32>
    %cst_79 = arith.constant 0.000000e+00 : f32
    %cst_80 = arith.constant 6.000000e+00 : f32
    %139 = vector.broadcast %cst_79 : f32 to vector<16x16xf32>
    %140 = arith.maximumf %139, %138 : vector<16x16xf32>
    %141 = vector.broadcast %cst_80 : f32 to vector<16x16xf32>
    %142 = arith.minimumf %141, %140 : vector<16x16xf32>
    %c0_81 = arith.constant 0 : index
    %c1_82 = arith.constant 1 : index
    %c0_83 = arith.constant 0 : index
    %c0_84 = arith.constant 0 : index
    %143 = vector.load %arg11[%c0_81, %c1_82, %c0_83, %c0_84] : memref<1x4x16x16xf32, #tpu.memory_space<vmem>>, vector<1x1x16x16xf32>
    %144 = vector.shape_cast %143 : vector<1x1x16x16xf32> to vector<16x16xf32>
    %145 = vector.shape_cast %142 : vector<16x16xf32> to vector<1x1x16x16xf32>
    tpu.vector_store %arg11[%c0_81, %c1_82, %c0_83, %c0_84], %145 {strides = array<i32>} : memref<1x4x16x16xf32, #tpu.memory_space<vmem>>, vector<1x1x16x16xf32>,
    %c2_85 = arith.constant 2 : index
    %c0_86 = arith.constant 0 : index
    %146 = vector.load %arg8[%c2_85, %c0_86] : memref<4x256xf32, #tpu.memory_space<vmem>>, vector<1x256xf32>
    %147 = vector.broadcast %146 : vector<1x256xf32> to vector<16x256xf32>
    %148 = arith.mulf %95, %147 : vector<16x256xf32>
    %c128_i32_87 = arith.constant 128 : i32
    %149 = tpu.dynamic_rotate %148 by %c128_i32_87 dim 1 : vector<16x256xf32>, i32 -> vector<16x256xf32>
    %150 = arith.addf %148, %149 : vector<16x256xf32>
    %c192_i32_88 = arith.constant 192 : i32
    %151 = tpu.dynamic_rotate %150 by %c192_i32_88 dim 1 : vector<16x256xf32>, i32 -> vector<16x256xf32>
    %152 = arith.addf %150, %151 : vector<16x256xf32>
    %c224_i32_89 = arith.constant 224 : i32
    %153 = tpu.dynamic_rotate %152 by %c224_i32_89 dim 1 : vector<16x256xf32>, i32 -> vector<16x256xf32>
    %154 = arith.addf %152, %153 : vector<16x256xf32>
    %c240_i32_90 = arith.constant 240 : i32
    %155 = tpu.dynamic_rotate %154 by %c240_i32_90 dim 1 : vector<16x256xf32>, i32 -> vector<16x256xf32>
    %156 = arith.addf %154, %155 : vector<16x256xf32>
    %157 = vector.extract_strided_slice %156 {offsets = [0, 0], sizes = [16, 16], strides = [1, 1]} : vector<16x256xf32> to vector<16x16xf32>
    %c2_91 = arith.constant 2 : index
    %158 = memref.load %arg9[%c2_91] : memref<4xf32, #tpu.memory_space<smem>>
    %159 = vector.broadcast %158 : f32 to vector<16x16xf32>
    %160 = arith.mulf %157, %159 : vector<16x16xf32>
    %c2_92 = arith.constant 2 : index
    %161 = memref.load %arg10[%c2_92] : memref<4xf32, #tpu.memory_space<smem>>
    %162 = vector.broadcast %161 : f32 to vector<16x16xf32>
    %163 = arith.addf %160, %162 : vector<16x16xf32>
    %cst_93 = arith.constant 0.000000e+00 : f32
    %cst_94 = arith.constant 6.000000e+00 : f32
    %164 = vector.broadcast %cst_93 : f32 to vector<16x16xf32>
    %165 = arith.maximumf %164, %163 : vector<16x16xf32>
    %166 = vector.broadcast %cst_94 : f32 to vector<16x16xf32>
    %167 = arith.minimumf %166, %165 : vector<16x16xf32>
    %c0_95 = arith.constant 0 : index
    %c2_96 = arith.constant 2 : index
    %c0_97 = arith.constant 0 : index
    %c0_98 = arith.constant 0 : index
    %168 = vector.load %arg11[%c0_95, %c2_96, %c0_97, %c0_98] : memref<1x4x16x16xf32, #tpu.memory_space<vmem>>, vector<1x1x16x16xf32>
    %169 = vector.shape_cast %168 : vector<1x1x16x16xf32> to vector<16x16xf32>
    %170 = vector.shape_cast %167 : vector<16x16xf32> to vector<1x1x16x16xf32>
    tpu.vector_store %arg11[%c0_95, %c2_96, %c0_97, %c0_98], %170 {strides = array<i32>} : memref<1x4x16x16xf32, #tpu.memory_space<vmem>>, vector<1x1x16x16xf32>,
    %c3_99 = arith.constant 3 : index
    %c0_100 = arith.constant 0 : index
    %171 = vector.load %arg8[%c3_99, %c0_100] : memref<4x256xf32, #tpu.memory_space<vmem>>, vector<1x256xf32>
    %172 = vector.broadcast %171 : vector<1x256xf32> to vector<16x256xf32>
    %173 = arith.mulf %95, %172 : vector<16x256xf32>
    %c128_i32_101 = arith.constant 128 : i32
    %174 = tpu.dynamic_rotate %173 by %c128_i32_101 dim 1 : vector<16x256xf32>, i32 -> vector<16x256xf32>
    %175 = arith.addf %173, %174 : vector<16x256xf32>
    %c192_i32_102 = arith.constant 192 : i32
    %176 = tpu.dynamic_rotate %175 by %c192_i32_102 dim 1 : vector<16x256xf32>, i32 -> vector<16x256xf32>
    %177 = arith.addf %175, %176 : vector<16x256xf32>
    %c224_i32_103 = arith.constant 224 : i32
    %178 = tpu.dynamic_rotate %177 by %c224_i32_103 dim 1 : vector<16x256xf32>, i32 -> vector<16x256xf32>
    %179 = arith.addf %177, %178 : vector<16x256xf32>
    %c240_i32_104 = arith.constant 240 : i32
    %180 = tpu.dynamic_rotate %179 by %c240_i32_104 dim 1 : vector<16x256xf32>, i32 -> vector<16x256xf32>
    %181 = arith.addf %179, %180 : vector<16x256xf32>
    %182 = vector.extract_strided_slice %181 {offsets = [0, 0], sizes = [16, 16], strides = [1, 1]} : vector<16x256xf32> to vector<16x16xf32>
    %c3_105 = arith.constant 3 : index
    %183 = memref.load %arg9[%c3_105] : memref<4xf32, #tpu.memory_space<smem>>
    %184 = vector.broadcast %183 : f32 to vector<16x16xf32>
    %185 = arith.mulf %182, %184 : vector<16x16xf32>
    %c3_106 = arith.constant 3 : index
    %186 = memref.load %arg10[%c3_106] : memref<4xf32, #tpu.memory_space<smem>>
    %187 = vector.broadcast %186 : f32 to vector<16x16xf32>
    %188 = arith.addf %185, %187 : vector<16x16xf32>
    %cst_107 = arith.constant 0.000000e+00 : f32
    %cst_108 = arith.constant 6.000000e+00 : f32
    %189 = vector.broadcast %cst_107 : f32 to vector<16x16xf32>
    %190 = arith.maximumf %189, %188 : vector<16x16xf32>
    %191 = vector.broadcast %cst_108 : f32 to vector<16x16xf32>
    %192 = arith.minimumf %191, %190 : vector<16x16xf32>
    %c0_109 = arith.constant 0 : index
    %c3_110 = arith.constant 3 : index
    %c0_111 = arith.constant 0 : index
    %c0_112 = arith.constant 0 : index
    %193 = vector.load %arg11[%c0_109, %c3_110, %c0_111, %c0_112] : memref<1x4x16x16xf32, #tpu.memory_space<vmem>>, vector<1x1x16x16xf32>
    %194 = vector.shape_cast %193 : vector<1x1x16x16xf32> to vector<16x16xf32>
    %195 = vector.shape_cast %192 : vector<16x16xf32> to vector<1x1x16x16xf32>
    tpu.vector_store %arg11[%c0_109, %c3_110, %c0_111, %c0_112], %195 {strides = array<i32>} : memref<1x4x16x16xf32, #tpu.memory_space<vmem>>, vector<1x1x16x16xf32>,
    return
  }
  func.func @transform_0(%arg0: i32) -> (i32, i32, i32, i32) {
    %c0_i32 = arith.constant 0 : i32
    %c0_i32_0 = arith.constant 0 : i32
    %c0_i32_1 = arith.constant 0 : i32
    %c0_i32_2 = arith.constant 0 : i32
    return %arg0, %c0_i32, %c0_i32_0, %c0_i32_1 : i32, i32, i32, i32
  }
  func.func @transform_1(%arg0: i32) -> (i32, i32) {
    %c0_i32 = arith.constant 0 : i32
    %c0_i32_0 = arith.constant 0 : i32
    %c0_i32_1 = arith.constant 0 : i32
    return %c0_i32, %c0_i32_0 : i32, i32
  }
  func.func @transform_2(%arg0: i32) -> (i32, i32) {
    %c0_i32 = arith.constant 0 : i32
    %c0_i32_0 = arith.constant 0 : i32
    %c0_i32_1 = arith.constant 0 : i32
    return %c0_i32, %c0_i32_0 : i32, i32
  }
  func.func @transform_3(%arg0: i32) -> (i32, i32) {
    %c0_i32 = arith.constant 0 : i32
    %c0_i32_0 = arith.constant 0 : i32
    %c0_i32_1 = arith.constant 0 : i32
    return %c0_i32, %c0_i32_0 : i32, i32
  }
  func.func @transform_4(%arg0: i32) -> (i32, i32) {
    %c0_i32 = arith.constant 0 : i32
    %c0_i32_0 = arith.constant 0 : i32
    %c0_i32_1 = arith.constant 0 : i32
    return %c0_i32, %c0_i32_0 : i32, i32
  }
  func.func @transform_5(%arg0: i32) -> (i32, i32) {
    %c0_i32 = arith.constant 0 : i32
    %c0_i32_0 = arith.constant 0 : i32
    %c0_i32_1 = arith.constant 0 : i32
    return %c0_i32, %c0_i32_0 : i32, i32
  }
  func.func @transform_6(%arg0: i32) -> (i32, i32) {
    %c0_i32 = arith.constant 0 : i32
    %c0_i32_0 = arith.constant 0 : i32
    %c0_i32_1 = arith.constant 0 : i32
    return %c0_i32, %c0_i32_0 : i32, i32
  }
  func.func @transform_7(%arg0: i32) -> (i32, i32) {
    %c0_i32 = arith.constant 0 : i32
    %c0_i32_0 = arith.constant 0 : i32
    %c0_i32_1 = arith.constant 0 : i32
    return %c0_i32, %c0_i32_0 : i32, i32
  }
  func.func @transform_8(%arg0: i32) -> i32 {
    %c0_i32 = arith.constant 0 : i32
    %c0_i32_0 = arith.constant 0 : i32
    return %c0_i32 : i32
  }
  func.func @transform_9(%arg0: i32) -> i32 {
    %c0_i32 = arith.constant 0 : i32
    %c0_i32_0 = arith.constant 0 : i32
    return %c0_i32 : i32
  }
  func.func @transform_10(%arg0: i32) -> (i32, i32, i32, i32) {
    %c0_i32 = arith.constant 0 : i32
    %c0_i32_0 = arith.constant 0 : i32
    %c0_i32_1 = arith.constant 0 : i32
    %c0_i32_2 = arith.constant 0 : i32
    return %arg0, %c0_i32, %c0_i32_0, %c0_i32_1 : i32, i32, i32, i32
  }
}

</mosaic_0001>

<bundles_post_ra>
// kernel: skip_linear_block.1
= control target key start
LH: loop header
LB: loop body
LE: loop exit
PB: predicated region body
PF: predicated region fallthrough
CT: control target
= control target key end

     0   :  { %15 = vsyncpa [#allocation5], 0  ;;  %s2477_s0 = inlined_call_operand.vmem [shape: f32[2,4,16,16], index: 0, kind: input, shape index: {}]   ;;  %s2478_s1 = inlined_call_operand.vmem [shape: f32[4,256], index: 1, kind: input, shape index: {}]   ;;  %s2479_s2 = inlined_call_operand.vmem [shape: f32[1,256], index: 2, kind: input, shape index: {}]   ;;  %s2480_s3 = inlined_call_operand.vmem [shape: f32[1,256], index: 3, kind: input, shape index: {}]   ;;  %s2481_s4 = inlined_call_operand.vmem [shape: f32[9,256], index: 4, kind: input, shape index: {}]   ;;  %s2482_s5 = inlined_call_operand.vmem [shape: f32[1,256], index: 5, kind: input, shape index: {}]   ;;  %s2483_s6 = inlined_call_operand.vmem [shape: f32[1,256], index: 6, kind: input, shape index: {}]   ;;  %s2484_s7 = inlined_call_operand.vmem [shape: f32[4,256], index: 7, kind: input, shape index: {}]   ;;  %s2485_s8 = inlined_call_operand.vmem [shape: f32[4], index: 8, kind: input, shape index: {}]   ;;  %s2486_s9 = inlined_call_operand.vmem [shape: f32[4], index: 9, kind: input, shape index: {}]   ;;  %s2487_s10 = inlined_call_operand.hbm [shape: f32[2,4,16,16], index: 10, kind: output, shape index: {}]  }
   0x1   :  { %16 = vsyncpa [#allocation7], 0 }
   0x2   :  { %17 = vsyncpa [#allocation4], 0 }
   0x3   :  { %19 = vsyncpa [#allocation4 + $0x1], 0  ;;  %s1780_s13 = smov 0   ;;  %s1782_s14 = smov 0  }
   0x4   :  { %s1784_s15 = smov 0   ;;  %s1786_s16 = smov 0  }
   0x5 LB: > { %s1801_s17 = sadd.s32 4294967295, %s1708_s16   ;;  %s1488_s18 = sadd.s32 4294967294, %s1708_s16   ;;  %s1708_s16 = sphi %s1786_s16, %s2505_s16   ;;  %s1704_s15 = sphi %s1784_s15, %s2504_s15   ;;  %s1700_s14 = sphi %s1782_s14, %s2503_s14   ;;  %s1696_s13 = sphi %s1780_s13, %s2502_s13  }
   0x6   : > { %s1805_s19 = sadd.s32 1, %s1708_s16   ;;  %s247_s20 = sadd.s32 1, %s1704_s15 }
   0x7   : > { %s244_s21 = ssub.s32 %s1708_s16, %s1805_s19  ;;  %p257_p0 = scmp.ne.s32.totalorder %s1704_s15, %s1700_s14 }
   0x8   : > { %p245_p1 = scmp.eq.s32.totalorder %s244_s21, 0  ;;  %p258_p2 = scmp.eq.s32.totalorder %s1801_s17, 1 }
   0x9   : > { %p263_p3 = scmp.ne.s32.totalorder %s1700_s14, %s1696_s13  ;;  %p264_p4 = scmp.eq.s32.totalorder %s1488_s18, 1 }
   0xa   : > { %s1816_s22 = scalar_select %p245_p1, %s1704_s15, %s247_s20  }
   0xb   : > { %p1818_p5 = por %p258_p2, %p257_p0  ;;  %p1822_p6 = por %p264_p4, %p263_p3 }
   0xc   : > { %p1489_p7 = scmp.ge.s32.totalorder %s1708_s16, 1  ;;  %p271_p8 = scmp.lt.s32.totalorder %s1708_s16, 3 }
   0xd   : > { %s2491_s23 = scalar_select %p1818_p5, 1, 0 }
   0xe   : > { %s2492_s24 = scalar_select %p1822_p6, 1, 0 }
   0xf   : > { %p2488_p9 = scmp.eq.s32.totalorder %s1801_s17, 0  ;;  %p1829_p10 = pnand %p1489_p7, %p271_p8 }
  0x10   : > { %s305_s28 = sshll.u32 %s2485_s8, 4  ;;  %s316_s11 = sshll.u32 %s2486_s9, 4  ;;  %s306_s28 = int_to_ptr.vmem [resolvable:$true] %s305_s28  ;;  %s317_s11 = int_to_ptr.vmem [resolvable:$true] %s316_s11 }
  0x11   : > { %s2493_s25 = scalar_select %p1829_p10, 1, 0 }
  0x12   : > { %p1548_p11 = pneg %p1829_p10  ;;  %s1610_s18 = scalar_lea.vmem %s306_s28, 16 }
  0x13   : > { %p1611_p13 = scmp.ne.s32.totalorder %s306_s28, %s1610_s18  ;;  %p1618_p3 = scmp.lt.s32.totalorder %s306_s28, %s306_s28 }
  0x14   : > { %p1843_p12 = pnand %p2488_p9, %p1548_p11  ;;  %p1619_p4 = scmp.lt.s32.totalorder %s1610_s18, %s1610_s18 }
  0x16   : > { %p1612_p0 = pneg %p1843_p12  ;;  %p1620_p7 = por %p1619_p4, %p1618_p3 }
  0x18   : > { %p1613_p1 = pnand %p1612_p0, %p1611_p13 }
  0x1a   : > { %p1614_p2 = pneg %p1613_p1 }
  0x1c   : > { %p1621_p8 = pnand %p1620_p7, %p1614_p2 }
  0x1e   : > { %1624 = shalt.err (!%p1621_p8)
}
  0x1f   : > { %s1710_s20 = smov [#allocation3]   ;;  %s1625_s21 = scalar_lea.vmem %s317_s11, 16 }
  0x20   : > { %1551 = dma.vmem_to_smem (!%p1843_p12), %s306_s28, 16, %s1710_s20, [#allocation5]  }
  0x21   : > { %p1626_p11 = scmp.ne.s32.totalorder %s317_s11, %s1625_s21  ;;  %p1633_p5 = scmp.lt.s32.totalorder %s317_s11, %s317_s11 }
  0x22   : > { %p1634_p10 = scmp.lt.s32.totalorder %s1625_s21, %s1625_s21 }
  0x23   : > { %p1628_p9 = pnand %p1626_p11, %p1612_p0 }
  0x24   : > { %p1635_p13 = por %p1634_p10, %p1633_p5 }
  0x25   : > { %p1629_p6 = pneg %p1628_p9 }
  0x27   : > { %p1636_p1 = pnand %p1635_p13, %p1629_p6 }
  0x29   : > { %1639 = shalt.err (!%p1636_p1)
}
  0x2a   : > { %s1711_s26 = smov [#allocation6]   ;;  %p2495_p2 = scmp.ne.s32.totalorder %s2493_s25, 0 }
  0x2b   : > { %1554 = dma.vmem_to_smem (!%p1843_p12), %s317_s11, 16, %s1711_s26, [#allocation7]  }
  0x2c   : > { %337 = sbr.rel (%p2495_p2) target bundleno = 871 (0x367), region = 60  ;;  %p2496_p3 = scmp.eq.s32.totalorder (!%p2495_p2), %s1801_s17, 0 }
  0x31   : > { %1683 = dma.done.wait (%p2496_p3), [#allocation5], 16   ;;  %p2497_p4 = pmov %p2496_p3 }
  0x32   : > { %p2498_p9 = pmov %p2496_p3 }
  0x33   : > { %1685 = vsyncadd (%p2497_p4), [#allocation5], 4294967280 }
  0x34   : > { %1687 = dma.done.wait (%p2498_p9), [#allocation7], 16   ;;  %p2499_p5 = pmov %p2496_p3 }
  0x36   : > { %1689 = vsyncadd (%p2499_p5), [#allocation7], 4294967280 }
  0x37   : > { %347 = sfence }
  0x38   : > { %p380_p6 = scmp.lt.s32.totalorder %s1801_s17, 1  ;;  %s1712_s11 = smov 16   ;;  %v454_v8 = vlaneseq  ;;  %v1719_v9 = vmov 0.0   ;;  %vm431_vm1 = vcmask 130048   ;;  %vm434_vm2 = vcmask 261120  }
  0x39   : > { %s1713_s12 = smov 32   ;;  %s1714_s18 = smov 48   ;;  %vm437_vm3 = vcmask 392192   ;;  %vm440_vm4 = vcmask 523264   ;;  %vm443_vm5 = vcmask 654336   ;;  %vm446_vm6 = vcmask 785408  }
  0x3a   : > { %s381_s27 = scalar_select %p380_p6, %s1801_s17, 1  ;;  %vm756_vm0 = vcmp.lt.s32.totalorder %v454_v8, 256  ;;  %vm449_vm7 = vcmask 916480   ;;  %vm767_vm8 = vcmask 1040384   ;;  %vm888_vm9 = vcmask 1046528  }
  0x3b   : > { %s1715_s20 = smov 64   ;;  %s1716_s21 = smov 80   ;;  %758 = vst.msk [vmem:[#allocation2] ss:$8 sm:$0x3] %vm756_vm0, %v1719_v9  ;;  %vm1020_vm10 = vcmask 1045504  }
  0x3c   : > { %s1536_s28 = sshll.u32 %s381_s27, 6  ;;  %s1717_s26 = smov 96   ;;  %761 = vst.msk [vmem:[#allocation2 + $0x21] ss:$8 sm:$0x3] %vm756_vm0, %v1719_v9 }
  0x3d   : > { %s1868_s30 = scalar_lea.vmem %s2477_s0, %s1536_s28  ;;  %s1718_s27 = smov 112  }
  0x3e   : > { %v1871_v0 = vld [vmem:[%s1868_s30 + $0x10] sm:$0xff]  ;;  %v1874_v1 = vld [vmem:[%s1868_s30] sm:$0xff]  ;;  %v1881_v2 = vld [vmem:[%s1868_s30 + $0x18] sm:$0xff]  ;;  %s1721_s25 = smov 127   ;;  %s2396_s28 = sld [smem:[#allocation3 + $0x3]] }
  0x3f   : > { %473 = vrot.lane.b32.xlu1 %v1871_v0, %s1712_s11  ;;  %389 = vrot.lane.b32.xlu0 %v1874_v1, %s1712_s11  ;;  %v1884_v3 = vld [vmem:[%s1868_s30 + $0x8] sm:$0xff]  ;;  %v1910_v5 = vld [vmem:[%s1868_s30 + $0x20] sm:$0xff]  ;;  %s2401_s29 = sld [smem:[#allocation6 + $0x3]]  ;;  %p2500_p12 = scmp.ne.s32.totalorder %s2491_s23, 0 }
  0x40   : > { %v1907_v4 = vld [vmem:[%s1868_s30 + $0x28] sm:$0xff]  ;;  %v1941_v6 = vld [vmem:[%s1868_s30 + $0x38] sm:$0xff]  ;;  %v1944_v7 = vld [vmem:[%s1868_s30 + $0x30] sm:$0xff] }
  0x43   : > { %475 = vrot.lane.b32.xlu1 %v1881_v2, %s1712_s11  ;;  %391 = vrot.lane.b32.xlu0 %v1884_v3, %s1712_s11 }
  0x47   : > { %397 = vrot.lane.b32.xlu1 %v1884_v3, %s1713_s12  ;;  %395 = vrot.lane.b32.xlu0 %v1874_v1, %s1713_s12 }
  0x4b   : > { %481 = vrot.lane.b32.xlu1 %v1881_v2, %s1713_s12  ;;  %479 = vrot.lane.b32.xlu0 %v1871_v0, %s1713_s12 }
  0x4f   : > { %403 = vrot.lane.b32.xlu1 %v1884_v3, %s1714_s18  ;;  %401 = vrot.lane.b32.xlu0 %v1874_v1, %s1714_s18 }
  0x53   : > { %487 = vrot.lane.b32.xlu1 %v1881_v2, %s1714_s18  ;;  %485 = vrot.lane.b32.xlu0 %v1871_v0, %s1714_s18 }
  0x57   : > { %557 = vrot.lane.b32.xlu1 %v1907_v4, %s1712_s11  ;;  %555 = vrot.lane.b32.xlu0 %v1910_v5, %s1712_s11 }
  0x5b   : > { %409 = vrot.lane.b32.xlu1 %v1884_v3, %s1715_s20  ;;  %407 = vrot.lane.b32.xlu0 %v1874_v1, %s1715_s20 }
  0x5f   : > { %493 = vrot.lane.b32.xlu1 %v1881_v2, %s1715_s20  ;;  %491 = vrot.lane.b32.xlu0 %v1871_v0, %s1715_s20 }
  0x63   : > { %563 = vrot.lane.b32.xlu1 %v1907_v4, %s1713_s12  ;;  %561 = vrot.lane.b32.xlu0 %v1910_v5, %s1713_s12 }
  0x67   : > { %415 = vrot.lane.b32.xlu1 %v1884_v3, %s1716_s21  ;;  %413 = vrot.lane.b32.xlu0 %v1874_v1, %s1716_s21 }
  0x6b   : > { %499 = vrot.lane.b32.xlu1 %v1881_v2, %s1716_s21  ;;  %497 = vrot.lane.b32.xlu0 %v1871_v0, %s1716_s21 }
  0x6f   : > { %569 = vrot.lane.b32.xlu1 %v1907_v4, %s1714_s18  ;;  %567 = vrot.lane.b32.xlu0 %v1910_v5, %s1714_s18 }
  0x73   : > { %639 = vrot.lane.b32.xlu1 %v1941_v6, %s1712_s11  ;;  %637 = vrot.lane.b32.xlu0 %v1944_v7, %s1712_s11  ;;  %s1720_s11 = smov 1  }
  0x77   : > { %421 = vrot.lane.b32.xlu1 %v1884_v3, %s1717_s26  ;;  %419 = vrot.lane.b32.xlu0 %v1874_v1, %s1717_s26 }
  0x7b   : > { %505 = vrot.lane.b32.xlu1 %v1881_v2, %s1717_s26  ;;  %503 = vrot.lane.b32.xlu0 %v1871_v0, %s1717_s26 }
  0x7f   : > { %575 = vrot.lane.b32.xlu1 %v1907_v4, %s1715_s20  ;;  %573 = vrot.lane.b32.xlu0 %v1910_v5, %s1715_s20 }
  0x83   : > { %645 = vrot.lane.b32.xlu1 %v1941_v6, %s1713_s12  ;;  %643 = vrot.lane.b32.xlu0 %v1944_v7, %s1713_s12  ;;  %s2387_s12 = sld [smem:[#allocation6 + $0x1]] }
  0x87   : > { %427 = vrot.lane.b32.xlu1 %v1884_v3, %s1718_s27  ;;  %425 = vrot.lane.b32.xlu0 %v1874_v1, %s1718_s27 }
  0x8b   : > { %511 = vrot.lane.b32.xlu1 %v1881_v2, %s1718_s27  ;;  %509 = vrot.lane.b32.xlu0 %v1871_v0, %s1718_s27 }
  0x8f   : > { %581 = vrot.lane.b32.xlu1 %v1907_v4, %s1716_s21  ;;  %579 = vrot.lane.b32.xlu0 %v1910_v5, %s1716_s21 }
  0x93   : > { %651 = vrot.lane.b32.xlu1 %v1941_v6, %s1714_s18  ;;  %649 = vrot.lane.b32.xlu0 %v1944_v7, %s1714_s18  ;;  %s2389_s18 = sld [smem:[#allocation3 + $0x2]] }
  0x97   : > { %587 = vrot.lane.b32.xlu1 %v1907_v4, %s1717_s26  ;;  %585 = vrot.lane.b32.xlu0 %v1910_v5, %s1717_s26 }
  0x9b   : > { %657 = vrot.lane.b32.xlu1 %v1941_v6, %s1715_s20  ;;  %655 = vrot.lane.b32.xlu0 %v1944_v7, %s1715_s20 }
  0x9f   : > { %593 = vrot.lane.b32.xlu1 %v1907_v4, %s1718_s27  ;;  %591 = vrot.lane.b32.xlu0 %v1910_v5, %s1718_s27 }
  0xa3   : > { %663 = vrot.lane.b32.xlu1 %v1941_v6, %s1716_s21  ;;  %661 = vrot.lane.b32.xlu0 %v1944_v7, %s1716_s21  ;;  %s377_s21 = sand.u32 1, %s1700_s14  }
  0xa7   : > { %669 = vrot.lane.b32.xlu1 %v1941_v6, %s1717_s26  ;;  %667 = vrot.lane.b32.xlu0 %v1944_v7, %s1717_s26 }
  0xab   : > { %675 = vrot.lane.b32.xlu1 %v1941_v6, %s1718_s27  ;;  %673 = vrot.lane.b32.xlu0 %v1944_v7, %s1718_s27 }
  0xb1   : > { %v474_v10 = vpop.permute.xlu1 %473  ;;  %v390_v11 = vpop.permute.xlu0 %389 }
  0xb2   : > { %v515_v21 = vsel %vm431_vm1, %v1871_v0, %v474_v10  ;;  %v432_v30 = vsel %vm431_vm1, %v1874_v1, %v390_v11  ;;  %v455_v0 = vshrl.u32 %v454_v8, 7  ;;  %v1501_v10 = vld [vmem:[%s2478_s1 + $0x1] ss:$4 sm:$0x3] }
  0xb5   : > { %v476_v12 = vpop.permute.xlu1 %475  ;;  %v392_v13 = vpop.permute.xlu0 %391 }
  0xb6   : > { %v516_v20 = vsel %vm431_vm1, %v1881_v2, %v476_v12  ;;  %v433_v31 = vsel %vm431_vm1, %v1884_v3, %v392_v13  ;;  %v2046_v3 = vsub.s32 0, %v455_v0 }
  0xb9   : > { %v398_v14 = vpop.permute.xlu1 %397  ;;  %v396_v15 = vpop.permute.xlu0 %395 }
  0xba   : > { %v436_v32 = vsel %vm434_vm2, %v433_v31, %v398_v14  ;;  %v435_v33 = vsel %vm434_vm2, %v432_v30, %v396_v15 }
  0xbd   : > { %v482_v16 = vpop.permute.xlu1 %481  ;;  %v480_v17 = vpop.permute.xlu0 %479 }
  0xbe   : > { %v518_v22 = vsel %vm434_vm2, %v516_v20, %v482_v16  ;;  %v517_v23 = vsel %vm434_vm2, %v515_v21, %v480_v17  ;;  %v535_v20 = vrot.slane %v1501_v10, %v2046_v3 }
  0xc1   : > { %v404_v18 = vpop.permute.xlu1 %403  ;;  %v402_v19 = vpop.permute.xlu0 %401 }
  0xc2   : > { %v439_v34 = vsel %vm437_vm3, %v436_v32, %v404_v18  ;;  %v438_v35 = vsel %vm437_vm3, %v435_v33, %v402_v19 }
  0xc5   : > { %v488_v24 = vpop.permute.xlu1 %487  ;;  %v486_v25 = vpop.permute.xlu0 %485 }
  0xc6   : > { %v520_v26 = vsel %vm437_vm3, %v518_v22, %v488_v24  ;;  %v519_v27 = vsel %vm437_vm3, %v517_v23, %v486_v25 }
  0xc9   : > { %v558_v28 = vpop.permute.xlu1 %557  ;;  %v556_v29 = vpop.permute.xlu0 %555 }
  0xca   : > { %v598_v44 = vsel %vm431_vm1, %v1907_v4, %v558_v28  ;;  %v597_v45 = vsel %vm431_vm1, %v1910_v5, %v556_v29  ;;  %v2048_v4 = vsub.s32 1, %v455_v0  ;;  %v452_v5 = vld [vmem:[%s2478_s1] ss:$4 sm:$0x3] }
  0xcb   : > { %v457_v13 = vrot.slane %v452_v5, %v2046_v3 }
  0xcc   : > { %v461_v14 = vrot.slane %v452_v5, %v2048_v4  ;;  %v539_v21 = vrot.slane %v1501_v10, %v2048_v4 }
  0xcd   : > { %v410_v36 = vpop.permute.xlu1 %409  ;;  %v408_v37 = vpop.permute.xlu0 %407 }
  0xce   : > { %v442_v38 = vsel %vm440_vm4, %v439_v34, %v410_v36  ;;  %v441_v39 = vsel %vm440_vm4, %v438_v35, %v408_v37 }
  0xd1   : > { %v494_v40 = vpop.permute.xlu1 %493  ;;  %v492_v41 = vpop.permute.xlu0 %491 }
  0xd2   : > { %v522_v42 = vsel %vm440_vm4, %v520_v26, %v494_v40  ;;  %v521_v43 = vsel %vm440_vm4, %v519_v27, %v492_v41 }
  0xd5   : > { %v564_v46 = vpop.permute.xlu1 %563  ;;  %v562_v47 = vpop.permute.xlu0 %561 }
  0xd6   : > { %v2032_v48 = vsel %vm434_vm2, %v598_v44, %v564_v46  ;;  %v2035_v49 = vsel %vm434_vm2, %v597_v45, %v562_v47 }
  0xd9   : > { %v416_v50 = vpop.permute.xlu1 %415  ;;  %v414_v51 = vpop.permute.xlu0 %413 }
  0xda   : > { %v445_v9 = vsel %vm443_vm5, %v442_v38, %v416_v50  ;;  %v444_v11 = vsel %vm443_vm5, %v441_v39, %v414_v51  ;;  %v1504_v50 = vld [vmem:[%s2478_s1 + $0x2] ss:$4 sm:$0x3] }
  0xdb   : > { %v621_v0 = vrot.slane %v1504_v50, %v2048_v4 }
  0xdd   : > { %v500_v52 = vpop.permute.xlu1 %499  ;;  %v498_v53 = vpop.permute.xlu0 %497 }
  0xde   : > { %v524_v22 = vsel %vm443_vm5, %v522_v42, %v500_v52  ;;  %v523_v23 = vsel %vm443_vm5, %v521_v43, %v498_v53 }
  0xe1   : > { %v570_v54 = vpop.permute.xlu1 %569  ;;  %v568_v55 = vpop.permute.xlu0 %567 }
  0xe2   : > { %v602_v53 = vsel %vm437_vm3, %v2032_v48, %v570_v54 }
  0xe5   : > { %v2037_v56 = vpop.permute.xlu1 %639  ;;  %v2039_v57 = vpop.permute.xlu0 %637 }
  0xe9   : > { %v422_v58 = vpop.permute.xlu1 %421  ;;  %v420_v59 = vpop.permute.xlu0 %419 }
  0xea   : > { %v448_v12 = vsel %vm446_vm6, %v445_v9, %v422_v58  ;;  %v447_v17 = vsel %vm446_vm6, %v444_v11, %v420_v59  ;;  %v601_v58 = vsel %vm437_vm3, %v2035_v49, %v568_v55 }
  0xed   : > { %v506_v60 = vpop.permute.xlu1 %505  ;;  %v504_v61 = vpop.permute.xlu0 %503 }
  0xee   : > { %v526_v24 = vsel %vm446_vm6, %v524_v22, %v506_v60  ;;  %v525_v25 = vsel %vm446_vm6, %v523_v23, %v504_v61  ;;  %v617_v61 = vrot.slane %v1504_v50, %v2046_v3  ;;  %v1507_v22 = vld [vmem:[%s2478_s1 + $0x3] ss:$4 sm:$0x3] }
  0xf1   : > { %v576_v62 = vpop.permute.xlu1 %575  ;;  %v574_v63 = vpop.permute.xlu0 %573 }
  0xf2   : > { %v604_v59 = vsel %vm440_vm4, %v602_v53, %v576_v62  ;;  %v603_v60 = vsel %vm440_vm4, %v601_v58, %v574_v63 }
  0xf5   : > { %v2042_v1 = vpop.permute.xlu1 %645  ;;  %v2044_v2 = vpop.permute.xlu0 %643 }
  0xf9   : > { %v428_v15 = vpop.permute.xlu1 %427  ;;  %v426_v16 = vpop.permute.xlu0 %425 }
  0xfa   : > { %v451_v18 = vsel %vm449_vm7, %v448_v12, %v428_v15  ;;  %v450_v19 = vsel %vm449_vm7, %v447_v17, %v426_v16 }
  0xfb   : > { %v466_v26 = vmul.f32 %v457_v13, %v451_v18  ;;  %v467_v27 = vmul.f32 %v461_v14, %v451_v18  ;;  %v464_v30 = vmul.f32 %v457_v13, %v450_v19  ;;  %v465_v31 = vmul.f32 %v461_v14, %v450_v19 }
  0xfd   : > { %v512_v28 = vpop.permute.xlu1 %511  ;;  %v510_v29 = vpop.permute.xlu0 %509 }
  0xfe   : > { %v528_v32 = vsel %vm449_vm7, %v526_v24, %v512_v28  ;;  %v527_v33 = vsel %vm449_vm7, %v525_v25, %v510_v29  ;;  %v703_v28 = vrot.slane %v1507_v22, %v2048_v4 }
  0xff   : > { %v544_v34 = vmul.f32 %v535_v20, %v528_v32  ;;  %v545_v35 = vmul.f32 %v539_v21, %v528_v32  ;;  %v542_v36 = vmul.f32 %v535_v20, %v527_v33  ;;  %v543_v37 = vmul.f32 %v539_v21, %v527_v33  ;;  %v730_v32 = vld [vmem:[%s2480_s3] sm:$0x3] }
 0x100   : > { %v680_v20 = vsel %vm431_vm1, %v1941_v6, %v2037_v56  ;;  %v679_v21 = vsel %vm431_vm1, %v1944_v7, %v2039_v57  ;;  %v699_v57 = vrot.slane %v1507_v22, %v2046_v3 }
 0x101   : > { %v548_v38 = vadd.f32 %v544_v34, %v466_v26  ;;  %v549_v39 = vadd.f32 %v545_v35, %v467_v27  ;;  %v546_v40 = vadd.f32 %v542_v36, %v464_v30  ;;  %v547_v41 = vadd.f32 %v543_v37, %v465_v31  ;;  %v582_v42 = vpop.permute.xlu1 %581  ;;  %v580_v43 = vpop.permute.xlu0 %579 }
 0x102   : > { %v606_v5 = vsel %vm443_vm5, %v604_v59, %v582_v42  ;;  %v605_v9 = vsel %vm443_vm5, %v603_v60, %v580_v43  ;;  %v682_v23 = vsel %vm434_vm2, %v680_v20, %v2042_v1  ;;  %v681_v24 = vsel %vm434_vm2, %v679_v21, %v2044_v2  ;;  %v714_v1 = vld [vmem:[%s2479_s2] sm:$0x3] }
 0x103   : > { %v719_v35 = vrot.slane %v714_v1, %v2046_v3  ;;  %v723_v36 = vrot.slane %v714_v1, %v2048_v4  ;;  %v735_v43 = vrot.slane %v730_v32, %v2046_v3 }
 0x105   : > { %v652_v44 = vpop.permute.xlu1 %651  ;;  %v650_v45 = vpop.permute.xlu0 %649 }
 0x106   : > { %v684_v27 = vsel %vm437_vm3, %v682_v23, %v652_v44  ;;  %v683_v6 = vsel %vm437_vm3, %v681_v24, %v650_v45  ;;  %v739_v44 = vrot.slane %v730_v32, %v2048_v4 }
 0x109   : > { %v588_v46 = vpop.permute.xlu1 %587  ;;  %v586_v47 = vpop.permute.xlu0 %585 }
 0x10a   : > { %v608_v10 = vsel %vm446_vm6, %v606_v5, %v588_v46  ;;  %v607_v11 = vsel %vm446_vm6, %v605_v9, %v586_v47 }
 0x10d   : > { %v658_v51 = vpop.permute.xlu1 %657  ;;  %v656_v52 = vpop.permute.xlu0 %655 }
 0x10e   : > { %v686_v56 = vsel %vm440_vm4, %v684_v27, %v658_v51  ;;  %v685_v7 = vsel %vm440_vm4, %v683_v6, %v656_v52 }
 0x111   : > { %v594_v48 = vpop.permute.xlu1 %593  ;;  %v592_v54 = vpop.permute.xlu0 %591 }
 0x112   : > { %v610_v49 = vsel %vm449_vm7, %v608_v10, %v594_v48  ;;  %v609_v55 = vsel %vm449_vm7, %v607_v11, %v592_v54 }
 0x113   : > { %v626_v62 = vmul.f32 %v617_v61, %v610_v49  ;;  %v627_v63 = vmul.f32 %v621_v0, %v610_v49  ;;  %v624_v12 = vmul.f32 %v617_v61, %v609_v55  ;;  %v625_v13 = vmul.f32 %v621_v0, %v609_v55 }
 0x115   : > { %v630_v14 = vadd.f32 %v626_v62, %v548_v38  ;;  %v631_v15 = vadd.f32 %v627_v63, %v549_v39  ;;  %v628_v16 = vadd.f32 %v624_v12, %v546_v40  ;;  %v629_v17 = vadd.f32 %v625_v13, %v547_v41  ;;  %v664_v18 = vpop.permute.xlu1 %663  ;;  %v662_v19 = vpop.permute.xlu0 %661 }
 0x116   : > { %v688_v2 = vsel %vm443_vm5, %v686_v56, %v664_v18  ;;  %v687_v29 = vsel %vm443_vm5, %v685_v7, %v662_v19 }
 0x119   : > { %v670_v25 = vpop.permute.xlu1 %669  ;;  %v668_v26 = vpop.permute.xlu0 %667 }
 0x11a   : > { %v690_v30 = vsel %vm446_vm6, %v688_v2, %v670_v25  ;;  %v689_v31 = vsel %vm446_vm6, %v687_v29, %v668_v26 }
 0x11d   : > { %v676_v33 = vpop.permute.xlu1 %675  ;;  %v674_v34 = vpop.permute.xlu0 %673 }
 0x11e   : > { %v692_v37 = vsel %vm449_vm7, %v690_v30, %v676_v33  ;;  %v691_v38 = vsel %vm449_vm7, %v689_v31, %v674_v34 }
 0x11f   : > { %v708_v39 = vmul.f32 %v699_v57, %v692_v37  ;;  %v709_v40 = vmul.f32 %v703_v28, %v692_v37  ;;  %v706_v41 = vmul.f32 %v699_v57, %v691_v38  ;;  %v707_v42 = vmul.f32 %v703_v28, %v691_v38 }
 0x121   : > { %v712_v45 = vadd.f32 %v708_v39, %v630_v14  ;;  %v713_v46 = vadd.f32 %v709_v40, %v631_v15  ;;  %v710_v47 = vadd.f32 %v706_v41, %v628_v16  ;;  %v711_v50 = vadd.f32 %v707_v42, %v629_v17  ;;  %v1511_v16 = vld [vmem:[%s2481_s4 + $0x4] ss:$8 sm:$0x3]  ;;  %v1514_v17 = vld [vmem:[%s2481_s4 + $0x7] ss:$8 sm:$0x3] }
 0x122   : > { %v942_v18 = vrot.slane %v1511_v16, %v2046_v3  ;;  %v946_v21 = vrot.slane %v1511_v16, %v2048_v4  ;;  %v1074_v22 = vrot.slane %v1514_v17, %v2046_v3  ;;  %v1078_v23 = vrot.slane %v1514_v17, %v2048_v4 }
 0x123   : > { %v728_v51 = vmul.f32 %v719_v35, %v712_v45  ;;  %v729_v52 = vmul.f32 %v723_v36, %v713_v46  ;;  %v726_v53 = vmul.f32 %v719_v35, %v710_v47  ;;  %v727_v58 = vmul.f32 %v723_v36, %v711_v50 }
 0x125   : > { %v744_v59 = vadd.f32 %v735_v43, %v728_v51  ;;  %v745_v60 = vadd.f32 %v739_v44, %v729_v52  ;;  %v742_v61 = vadd.f32 %v735_v43, %v726_v53  ;;  %v743_v0 = vadd.f32 %v739_v44, %v727_v58 }
 0x127   : > { %v748_v5 = vmax.f32 %v744_v59, 0.0  ;;  %v749_v9 = vmax.f32 %v745_v60, 0.0  ;;  %v746_v10 = vmax.f32 %v742_v61, 0.0  ;;  %v747_v11 = vmax.f32 %v743_v0, 0.0 }
 0x129   : > { %v752_v48 = vmin.f32 %v748_v5, 6.0  ;;  %v753_v54 = vmin.f32 %v749_v9, 6.0  ;;  %v750_v49 = vmin.f32 %v746_v10, 6.0  ;;  %v751_v55 = vmin.f32 %v747_v11, 6.0 }
 0x12b   : > { %v770_v62 = vrot.slane %v752_v48, 7  ;;  %v772_v63 = vrot.slane %v753_v54, 7  ;;  %v768_v12 = vrot.slane %v750_v49, 7  ;;  %v769_v13 = vrot.slane %v751_v55, 7 }
 0x12d   : > { %784 = vst [vmem:[#allocation2 + $0x20] sm:$0x1] %v770_v62  ;;  %785 = vst [vmem:[#allocation2 + $0x28] sm:$0x1] %v772_v63  ;;  %v2124_v14 = vsel %vm767_vm8, %v768_v12, %v770_v62  ;;  %v2126_v15 = vsel %vm767_vm8, %v769_v13, %v772_v63 }
 0x12e   : > { %780 = vst [vmem:[#allocation2] sm:$0xfe] %v768_v12  ;;  %781 = vst [vmem:[#allocation2 + $0x8] sm:$0xfe] %v769_v13  ;;  %792 = vrot.lane.b32.xlu1 %v2124_v14, %s1720_s11  ;;  %v951_v2 = vmul.f32 %v942_v18, %v2124_v14  ;;  %v890_v30 = vrot.slane %v2124_v14, 1  ;;  %v952_v32 = vmul.f32 %v946_v21, %v2126_v15  ;;  %v893_v43 = vrot.slane %v2126_v15, 1 }
 0x12f   : > { %v1083_v33 = vmul.f32 %v1074_v22, %v2124_v14  ;;  %v1084_v34 = vmul.f32 %v1078_v23, %v2126_v15  ;;  %v1022_v16 = vrot.slane %v2124_v14, 2 }
 0x130   : > { %v962_v46 = vrot.slane %v951_v2, 1  ;;  %v965_v51 = vrot.slane %v952_v32, 1 }
 0x131   : > { %v1094_v52 = vrot.slane %v1083_v33, 2  ;;  %v1097_v60 = vrot.slane %v1084_v34, 2 }
 0x132   : > { %796 = vrot.lane.b32.xlu1 %v2126_v15, %s1720_s11 }
 0x134   : > { %v880_v25 = vld [vmem:[#allocation2 + $0x20] sm:$0x1]  ;;  %v881_v56 = vld [vmem:[#allocation2 + $0x28] sm:$0x1] }
 0x135   : > { %v2139_v19 = vld [vmem:[#allocation2] sm:$0xff]  ;;  %v877_v26 = vld [vmem:[#allocation2 + $0x8] sm:$0xfe]  ;;  %v953_v27 = vmul.f32 %v942_v18, %v880_v25  ;;  %v954_v57 = vmul.f32 %v946_v21, %v881_v56  ;;  %v895_v36 = vrot.slane %v880_v25, 1  ;;  %v897_v58 = vrot.slane %v881_v56, 1 }
 0x136   : > { %v2141_v20 = vld [vmem:[#allocation2] sm:$0xfe]  ;;  %790 = vrot.lane.b32.xlu0 %v2139_v19, %s1720_s11  ;;  %844 = vrot.lane.b32.xlu1 %v2124_v14, %s1721_s25  ;;  %v950_v6 = vmul.f32 %v946_v21, %v877_v26  ;;  %v2153_v1 = vld [vmem:[#allocation2 + $0x8] sm:$0xfc]  ;;  %v1015_v31 = vld [vmem:[#allocation2 + $0x28] sm:$0x3] }
 0x137   : > { %v949_v24 = vmul.f32 %v942_v18, %v2141_v20  ;;  %v2151_v7 = vld [vmem:[#allocation2] sm:$0xfc]  ;;  %v1014_v28 = vld [vmem:[#allocation2 + $0x20] sm:$0x3]  ;;  %v2156_v29 = vld [vmem:[#allocation2 + $0x8] sm:$0xff]  ;;  %v967_v37 = vrot.slane %v953_v27, 1  ;;  %v1082_v42 = vmul.f32 %v1078_v23, %v2153_v1  ;;  %v1086_v45 = vmul.f32 %v1078_v23, %v1015_v31 }
 0x138   : > { %v1081_v38 = vmul.f32 %v1074_v22, %v2151_v7  ;;  %v964_v39 = vrot.slane %v950_v6, 1  ;;  %v969_v40 = vrot.slane %v954_v57, 1  ;;  %v1085_v41 = vmul.f32 %v1074_v22, %v1014_v28 }
 0x139   : > { %v961_v35 = vrot.slane %v949_v24, 1  ;;  %v1096_v50 = vrot.slane %v1082_v42, 2  ;;  %v896_v53 = vsel %vm888_vm9, %v890_v30, %v895_v36  ;;  %v1101_v59 = vrot.slane %v1086_v45, 2 }
 0x13a   : > { %794 = vrot.lane.b32.xlu0 %v2156_v29, %s1720_s11  ;;  %848 = vrot.lane.b32.xlu1 %v2126_v15, %s1721_s25  ;;  %v1093_v44 = vrot.slane %v1081_v38, 2  ;;  %v1099_v47 = vrot.slane %v1085_v41, 2  ;;  %v2177_v0 = vsel %vm888_vm9, %v964_v39, %v965_v51  ;;  %v2180_v5 = vsel %vm888_vm9, %v962_v46, %v967_v37 }
 0x13b   : > { %v2174_v61 = vsel %vm888_vm9, %v961_v35, %v962_v46  ;;  %v2183_v9 = vsel %vm888_vm9, %v965_v51, %v969_v40  ;;  %v2189_v11 = vsel %vm1020_vm10, %v1096_v50, %v1097_v60  ;;  %v2195_v54 = vsel %vm1020_vm10, %v1097_v60, %v1101_v59 }
 0x13c   : > { %v2186_v10 = vsel %vm1020_vm10, %v1093_v44, %v1094_v52  ;;  %v2192_v48 = vsel %vm1020_vm10, %v1094_v52, %v1099_v47  ;;  %v889_v49 = vrot.slane %v2141_v20, 1  ;;  %v898_v55 = vsel %vm888_vm9, %v893_v43, %v897_v58 }
 0x13d   : > { %v892_v63 = vrot.slane %v877_v26, 1  ;;  %v1027_v13 = vrot.slane %v1014_v28, 2  ;;  %v1029_v18 = vrot.slane %v1015_v31, 2  ;;  %v1025_v20 = vrot.slane %v2126_v15, 2 }
 0x13e   : > { %842 = vrot.lane.b32.xlu0 %v2139_v19, %s1721_s25  ;;  %905 = vrot.lane.b32.xlu1 %v896_v53, %s1720_s11  ;;  %v891_v62 = vsel %vm888_vm9, %v889_v49, %v890_v30  ;;  %v1021_v21 = vrot.slane %v2151_v7, 2  ;;  %v1024_v24 = vrot.slane %v2153_v1, 2  ;;  %v2227_v6 = vand.u32 127, %v454_v8  ;;  %v805_v7 = vld [vmem:[%s2481_s4] ss:$8 sm:$0x3] }
 0x13f   : > { %v894_v12 = vsel %vm888_vm9, %v892_v63, %v893_v43  ;;  %v1028_v17 = vsel %vm1020_vm10, %v1022_v16, %v1027_v13  ;;  %v1030_v22 = vsel %vm1020_vm10, %v1025_v20, %v1029_v18  ;;  %v1508_v28 = vld [vmem:[%s2481_s4 + $0x1] ss:$8 sm:$0x3]  ;;  %v1509_v1 = vld [vmem:[%s2481_s4 + $0x2] ss:$8 sm:$0x3]  ;;  %v810_v2 = vrot.slane %v805_v7, %v2046_v3 }
 0x140   : > { %v1023_v23 = vsel %vm1020_vm10, %v1021_v21, %v1022_v16  ;;  %v1026_v25 = vsel %vm1020_vm10, %v1024_v24, %v1025_v20  ;;  %vm800_vm11 = vcmp.lt.s32.totalorder %v2227_v6, 1  ;;  %v814_v8 = vrot.slane %v805_v7, %v2048_v4  ;;  %v1510_v43 = vld [vmem:[%s2481_s4 + $0x3] ss:$8 sm:$0x3] }
 0x141   : > { %vm850_vm12 = vcmp.lt.s32.totalorder %v2227_v6, 127  ;;  %v827_v34 = vrot.slane %v1508_v28, %v2046_v3  ;;  %v831_v35 = vrot.slane %v1508_v28, %v2048_v4  ;;  %v861_v36 = vrot.slane %v1509_v1, %v2046_v3 }
 0x142   : > { %846 = vrot.lane.b32.xlu0 %v2156_v29, %s1721_s25  ;;  %909 = vrot.lane.b32.xlu1 %v898_v55, %s1720_s11  ;;  %v865_v37 = vrot.slane %v1509_v1, %v2048_v4  ;;  %v921_v51 = vrot.slane %v1510_v43, %v2046_v3  ;;  %v925_v52 = vrot.slane %v1510_v43, %v2048_v4 }
 0x143   : > { %v836_v45 = vmul.f32 %v827_v34, %v2124_v14  ;;  %v837_v46 = vmul.f32 %v831_v35, %v2126_v15 }
 0x146   : > { %903 = vrot.lane.b32.xlu0 %v891_v62, %s1720_s11  ;;  %981 = vrot.lane.b32.xlu1 %v896_v53, %s1721_s25 }
 0x14a   : > { %907 = vrot.lane.b32.xlu0 %v894_v12, %s1720_s11  ;;  %985 = vrot.lane.b32.xlu1 %v898_v55, %s1721_s25 }
 0x14e   : > { %979 = vrot.lane.b32.xlu0 %v891_v62, %s1721_s25  ;;  %1037 = vrot.lane.b32.xlu1 %v1028_v17, %s1720_s11 }
 0x152   : > { %983 = vrot.lane.b32.xlu0 %v894_v12, %s1721_s25  ;;  %1041 = vrot.lane.b32.xlu1 %v1030_v22, %s1720_s11 }
 0x156   : > { %1035 = vrot.lane.b32.xlu0 %v1023_v23, %s1720_s11  ;;  %1113 = vrot.lane.b32.xlu1 %v1028_v17, %s1721_s25 }
 0x15a   : > { %1039 = vrot.lane.b32.xlu0 %v1026_v25, %s1720_s11  ;;  %1117 = vrot.lane.b32.xlu1 %v1030_v22, %s1721_s25  ;;  %s2385_s11 = sld [smem:[#allocation3 + $0x1]] }
 0x15e   : > { %1111 = vrot.lane.b32.xlu0 %v1023_v23, %s1721_s25 }
 0x162   : > { %1115 = vrot.lane.b32.xlu0 %v1026_v25, %s1721_s25  ;;  %v834_v25 = vmul.f32 %v827_v34, %v2139_v19  ;;  %s1496_s25 = sshll.u32 %s377_s21, 6 }
 0x163   : > { %s2405_s30 = scalar_lea.vmem [#allocation8], %s1496_s25 }
 0x1a0   : > { %v793_v26 = vpop.permute.xlu1 %792 }
 0x1a4   : > { %v797_v27 = vpop.permute.xlu1 %796 }
 0x1a5   : > { %v802_v31 = vsel %vm800_vm11, %v793_v26, %v797_v27  ;;  %v804_v32 = vsel %vm800_vm11, %v797_v27, %v793_v26  ;;  %v835_v26 = vmul.f32 %v831_v35, %v2156_v29 }
 0x1a6   : > { %v819_v40 = vmul.f32 %v810_v2, %v804_v32  ;;  %v820_v41 = vmul.f32 %v814_v8, %v802_v31 }
 0x1a8   : > { %v791_v56 = vpop.permute.xlu0 %790  ;;  %v845_v57 = vpop.permute.xlu1 %844  ;;  %v840_v53 = vadd.f32 %v836_v45, %v819_v40  ;;  %v841_v58 = vadd.f32 %v837_v46, %v820_v41  ;;  %v1513_v40 = vld [vmem:[%s2481_s4 + $0x6] ss:$8 sm:$0x3] }
 0x1a9   : > { %v1053_v46 = vrot.slane %v1513_v40, %v2046_v3 }
 0x1ac   : > { %v795_v30 = vpop.permute.xlu0 %794  ;;  %v849_v33 = vpop.permute.xlu1 %848 }
 0x1ad   : > { %v852_v38 = vsel %vm850_vm12, %v845_v57, %v849_v33  ;;  %v854_v39 = vsel %vm850_vm12, %v849_v33, %v845_v57  ;;  %v801_v60 = vsel %vm800_vm11, %v791_v56, %v795_v30  ;;  %v803_v49 = vsel %vm800_vm11, %v795_v30, %v791_v56 }
 0x1ae   : > { %v870_v47 = vmul.f32 %v861_v36, %v852_v38  ;;  %v871_v50 = vmul.f32 %v865_v37, %v854_v39  ;;  %v817_v18 = vmul.f32 %v810_v2, %v803_v49  ;;  %v818_v20 = vmul.f32 %v814_v8, %v801_v60  ;;  %v1512_v2 = vld [vmem:[%s2481_s4 + $0x5] ss:$8 sm:$0x3] }
 0x1af   : > { %v1001_v34 = vrot.slane %v1512_v2, %v2048_v4 }
 0x1b0   : > { %v843_v42 = vpop.permute.xlu0 %842  ;;  %v906_v44 = vpop.permute.xlu1 %905  ;;  %v874_v62 = vadd.f32 %v870_v47, %v840_v53  ;;  %v875_v14 = vadd.f32 %v871_v50, %v841_v58  ;;  %v838_v28 = vadd.f32 %v834_v25, %v817_v18  ;;  %v839_v1 = vadd.f32 %v835_v26, %v818_v20 }
 0x1b1   : > { %v1057_v47 = vrot.slane %v1513_v40, %v2048_v4 }
 0x1b4   : > { %v847_v59 = vpop.permute.xlu0 %846  ;;  %v910_v55 = vpop.permute.xlu1 %909 }
 0x1b5   : > { %v912_v15 = vsel %vm800_vm11, %v906_v44, %v910_v55  ;;  %v914_v63 = vsel %vm800_vm11, %v910_v55, %v906_v44  ;;  %v851_v12 = vsel %vm850_vm12, %v843_v42, %v847_v59  ;;  %v853_v13 = vsel %vm850_vm12, %v847_v59, %v843_v42 }
 0x1b6   : > { %v930_v16 = vmul.f32 %v921_v51, %v914_v63  ;;  %v931_v17 = vmul.f32 %v925_v52, %v912_v15  ;;  %v868_v27 = vmul.f32 %v861_v36, %v851_v12  ;;  %v869_v56 = vmul.f32 %v865_v37, %v853_v13 }
 0x1b8   : > { %v904_v21 = vpop.permute.xlu0 %903  ;;  %v934_v22 = vadd.f32 %v930_v16, %v874_v62  ;;  %v935_v23 = vadd.f32 %v931_v17, %v875_v14  ;;  %v982_v24 = vpop.permute.xlu1 %981  ;;  %v872_v31 = vadd.f32 %v868_v27, %v838_v28  ;;  %v873_v32 = vadd.f32 %v869_v56, %v839_v1  ;;  %v1515_v62 = vld [vmem:[%s2481_s4 + $0x10] ss:$8 sm:$0x3] }
 0x1b9   : > { %v1129_v16 = vrot.slane %v1515_v62, %v2046_v3  ;;  %v1133_v17 = vrot.slane %v1515_v62, %v2048_v4 }
 0x1ba   : > { %v978_v7 = vadd.f32 %v2183_v9, %v935_v23  ;;  %v977_v57 = vadd.f32 %v2180_v5, %v934_v22  ;;  %v997_v5 = vrot.slane %v1512_v2, %v2046_v3  ;;  %v1144_v22 = vld [vmem:[%s2482_s5] sm:$0x3] }
 0x1bb   : > { %v1149_v28 = vrot.slane %v1144_v22, %v2046_v3  ;;  %v1153_v1 = vrot.slane %v1144_v22, %v2048_v4 }
 0x1bc   : > { %v908_v30 = vpop.permute.xlu0 %907  ;;  %v986_v29 = vpop.permute.xlu1 %985 }
 0x1bd   : > { %v911_v8 = vsel %vm800_vm11, %v904_v21, %v908_v30  ;;  %v913_v19 = vsel %vm800_vm11, %v908_v30, %v904_v21  ;;  %v988_v38 = vsel %vm850_vm12, %v982_v24, %v986_v29  ;;  %v990_v39 = vsel %vm850_vm12, %v986_v29, %v982_v24 }
 0x1be   : > { %v928_v33 = vmul.f32 %v921_v51, %v913_v19  ;;  %v929_v9 = vmul.f32 %v925_v52, %v911_v8  ;;  %v1006_v44 = vmul.f32 %v997_v5, %v988_v38  ;;  %v1007_v45 = vmul.f32 %v1001_v34, %v990_v39  ;;  %v1516_v39 = vld [vmem:[%s2484_s7 + $0x1] ss:$4 sm:$0x3] }
 0x1bf   : > { %v1240_v6 = vrot.slane %v1516_v39, %v2046_v3 }
 0x1c0   : > { %v932_v35 = vadd.f32 %v928_v33, %v872_v31  ;;  %v933_v36 = vadd.f32 %v929_v9, %v873_v32  ;;  %v980_v37 = vpop.permute.xlu0 %979  ;;  %v1038_v41 = vpop.permute.xlu1 %1037  ;;  %v1011_v59 = vadd.f32 %v1007_v45, %v978_v7 }
 0x1c2   : > { %v975_v42 = vadd.f32 %v2174_v61, %v932_v35  ;;  %v976_v43 = vadd.f32 %v2177_v0, %v933_v36  ;;  %v1010_v0 = vadd.f32 %v1006_v44, %v977_v57 }
 0x1c4   : > { %v984_v50 = vpop.permute.xlu0 %983  ;;  %v1042_v51 = vpop.permute.xlu1 %1041 }
 0x1c5   : > { %v987_v52 = vsel %vm850_vm12, %v980_v37, %v984_v50  ;;  %v989_v53 = vsel %vm850_vm12, %v984_v50, %v980_v37  ;;  %v1044_v58 = vsel %vm800_vm11, %v1038_v41, %v1042_v51  ;;  %v1046_v61 = vsel %vm800_vm11, %v1042_v51, %v1038_v41  ;;  %v1184_v37 = vld [vmem:[%s2484_s7] ss:$4 sm:$0x3] }
 0x1c6   : > { %v1062_v60 = vmul.f32 %v1053_v46, %v1046_v61  ;;  %v1063_v49 = vmul.f32 %v1057_v47, %v1044_v58  ;;  %v1004_v14 = vmul.f32 %v997_v5, %v987_v52  ;;  %v1005_v15 = vmul.f32 %v1001_v34, %v989_v53 }
 0x1c7   : > { %v1189_v45 = vrot.slane %v1184_v37, %v2046_v3  ;;  %v1244_v52 = vrot.slane %v1516_v39, %v2048_v4 }
 0x1c8   : > { %v1036_v55 = vpop.permute.xlu0 %1035  ;;  %v1066_v63 = vadd.f32 %v1062_v60, %v1010_v0  ;;  %v1067_v12 = vadd.f32 %v1063_v49, %v1011_v59  ;;  %v1114_v13 = vpop.permute.xlu1 %1113  ;;  %v1008_v23 = vadd.f32 %v1004_v14, %v975_v42  ;;  %v1009_v24 = vadd.f32 %v1005_v15, %v976_v43 }
 0x1ca   : > { %v1110_v18 = vadd.f32 %v2195_v54, %v1067_v12  ;;  %v1109_v20 = vadd.f32 %v2192_v48, %v1066_v63  ;;  %v1160_v48 = vld [vmem:[%s2483_s6] sm:$0x3] }
 0x1cb   : > { %v1165_v31 = vrot.slane %v1160_v48, %v2046_v3  ;;  %v1169_v32 = vrot.slane %v1160_v48, %v2048_v4 }
 0x1cc   : > { %v1040_v21 = vpop.permute.xlu0 %1039  ;;  %v1118_v27 = vpop.permute.xlu1 %1117 }
 0x1cd   : > { %v1043_v25 = vsel %vm800_vm11, %v1036_v55, %v1040_v21  ;;  %v1045_v26 = vsel %vm800_vm11, %v1040_v21, %v1036_v55  ;;  %v1120_v54 = vsel %vm850_vm12, %v1114_v13, %v1118_v27  ;;  %v1122_v57 = vsel %vm850_vm12, %v1118_v27, %v1114_v13 }
 0x1ce   : > { %v1060_v56 = vmul.f32 %v1053_v46, %v1045_v26  ;;  %v1061_v7 = vmul.f32 %v1057_v47, %v1043_v25  ;;  %v1138_v30 = vmul.f32 %v1129_v16, %v1120_v54  ;;  %v1139_v2 = vmul.f32 %v1133_v17, %v1122_v57  ;;  %v1526_v47 = vld [vmem:[%s2484_s7 + $0x3] ss:$4 sm:$0x3] }
 0x1cf   : > { %v1193_v46 = vrot.slane %v1184_v37, %v2048_v4  ;;  %v1344_v49 = vrot.slane %v1526_v47, %v2046_v3  ;;  %v1348_v55 = vrot.slane %v1526_v47, %v2048_v4 }
 0x1d0   : > { %v1064_v8 = vadd.f32 %v1060_v56, %v1008_v23  ;;  %v1065_v19 = vadd.f32 %v1061_v7, %v1009_v24  ;;  %v1112_v29 = vpop.permute.xlu0 %1111  ;;  %v1142_v33 = vadd.f32 %v1138_v30, %v1109_v20  ;;  %v1143_v9 = vadd.f32 %v1139_v2, %v1110_v18 }
 0x1d2   : > { %v1107_v5 = vadd.f32 %v2186_v10, %v1064_v8  ;;  %v1108_v34 = vadd.f32 %v2189_v11, %v1065_v19  ;;  %v1158_v35 = vmul.f32 %v1149_v28, %v1142_v33  ;;  %v1159_v36 = vmul.f32 %v1153_v1, %v1143_v9  ;;  %v1521_v11 = vld [vmem:[%s2484_s7 + $0x2] ss:$4 sm:$0x3] }
 0x1d3   : > { %v1292_v61 = vrot.slane %v1521_v11, %v2046_v3  ;;  %v1296_v0 = vrot.slane %v1521_v11, %v2048_v4 }
 0x1d4   : > { %v1116_v38 = vpop.permute.xlu0 %1115  ;;  %v1174_v10 = vadd.f32 %v1165_v31, %v1158_v35  ;;  %v1175_v42 = vadd.f32 %v1169_v32, %v1159_v36 }
 0x1d5   : > { %v1119_v40 = vsel %vm850_vm12, %v1112_v29, %v1116_v38  ;;  %v1121_v41 = vsel %vm850_vm12, %v1116_v38, %v1112_v29 }
 0x1d6   : > { %v1136_v43 = vmul.f32 %v1129_v16, %v1119_v40  ;;  %v1137_v44 = vmul.f32 %v1133_v17, %v1121_v41  ;;  %v1178_v50 = vmax.f32 %v1174_v10, 0.0  ;;  %v1179_v51 = vmax.f32 %v1175_v42, 0.0 }
 0x1d8   : > { %v1140_v53 = vadd.f32 %v1136_v43, %v1107_v5  ;;  %v1141_v58 = vadd.f32 %v1137_v44, %v1108_v34  ;;  %v1182_v59 = vmin.f32 %v1178_v50, 6.0  ;;  %v1183_v60 = vmin.f32 %v1179_v51, 6.0 }
 0x1da   : > { %v1156_v62 = vmul.f32 %v1149_v28, %v1140_v53  ;;  %v1157_v14 = vmul.f32 %v1153_v1, %v1141_v58  ;;  %v1198_v15 = vmul.f32 %v1189_v45, %v1182_v59  ;;  %v1199_v63 = vmul.f32 %v1193_v46, %v1183_v60 }
 0x1db   : > { %v1249_v12 = vmul.f32 %v1240_v6, %v1182_v59  ;;  %v1250_v13 = vmul.f32 %v1244_v52, %v1183_v60  ;;  %v1301_v18 = vmul.f32 %v1292_v61, %v1182_v59  ;;  %v1302_v20 = vmul.f32 %v1296_v0, %v1183_v60 }
 0x1dc   : > { %v1172_v16 = vadd.f32 %v1165_v31, %v1156_v62  ;;  %v1173_v17 = vadd.f32 %v1169_v32, %v1157_v14  ;;  %v1201_v21 = vadd.f32 %v1199_v63, %v1198_v15  ;;  %v1353_v23 = vmul.f32 %v1344_v49, %v1182_v59 }
 0x1dd   : > { %v1252_v22 = vadd.f32 %v1250_v13, %v1249_v12  ;;  %v1354_v24 = vmul.f32 %v1348_v55, %v1183_v60  ;;  %v1304_v27 = vadd.f32 %v1302_v20, %v1301_v18  ;;  %v1272_v13 = vstv %s2385_s11 }
 0x1de   : > { %v1176_v25 = vmax.f32 %v1172_v16, 0.0  ;;  %v1177_v26 = vmax.f32 %v1173_v17, 0.0  ;;  %1204 = vrot.lane.b32.xlu1 %v1201_v21, %s1715_s20  ;;  %v1276_v20 = vstv %s2387_s12 }
 0x1df   : > { %v1356_v3 = vadd.f32 %v1354_v24, %v1353_v23 }
 0x1e0   : > { %v1180_v4 = vmin.f32 %v1176_v25, 6.0  ;;  %v1181_v56 = vmin.f32 %v1177_v26, 6.0  ;;  %v1324_v25 = vstv %s2389_s18 }
 0x1e2   : > { %v1196_v7 = vmul.f32 %v1189_v45, %v1180_v4  ;;  %v1197_v48 = vmul.f32 %v1193_v46, %v1181_v56  ;;  %v1247_v54 = vmul.f32 %v1240_v6, %v1180_v4  ;;  %v1248_v57 = vmul.f32 %v1244_v52, %v1181_v56  ;;  %1255 = vrot.lane.b32.xlu1 %v1252_v22, %s1715_s20 }
 0x1e3   : > { %v1299_v28 = vmul.f32 %v1292_v61, %v1180_v4  ;;  %v1300_v1 = vmul.f32 %v1296_v0, %v1181_v56  ;;  %v1351_v30 = vmul.f32 %v1344_v49, %v1180_v4  ;;  %v1352_v2 = vmul.f32 %v1348_v55, %v1181_v56 }
 0x1e4   : > { %v1200_v8 = vadd.f32 %v1197_v48, %v1196_v7  ;;  %v1251_v19 = vadd.f32 %v1248_v57, %v1247_v54 }
 0x1e5   : > { %v1303_v29 = vadd.f32 %v1300_v1, %v1299_v28  ;;  %v1355_v31 = vadd.f32 %v1352_v2, %v1351_v30  ;;  %v1376_v30 = vstv %s2396_s28  ;;  %s1722_s28 = smov [#allocation8]  }
 0x1e6   : > { %1202 = vrot.lane.b32.xlu0 %v1200_v8, %s1715_s20  ;;  %1307 = vrot.lane.b32.xlu1 %v1304_v27, %s1715_s20  ;;  %s1644_s25 = sshll.u32 %s1722_s28, 4  ;;  %s1645_s25 = int_to_ptr.vmem [resolvable:$false] %s1644_s25 }
 0x1ea   : > { %1253 = vrot.lane.b32.xlu0 %v1251_v19, %s1715_s20  ;;  %1359 = vrot.lane.b32.xlu1 %v1356_v3, %s1715_s20 }
 0x1ee   : > { %1305 = vrot.lane.b32.xlu0 %v1303_v29, %s1715_s20 }
 0x1f2   : > { %1357 = vrot.lane.b32.xlu0 %v1355_v31, %s1715_s20  ;;  %s1220_s20 = sld [smem:[#allocation3]] }
 0x1f8   : > { %v1221_v62 = vstv %s1220_s20  ;;  %s1537_s20 = sshll.u32 %s1801_s17, 10 }
 0x1f9   : > { %s2429_s18 = scalar_lea.hbm %s2487_s10, %s1537_s20 }
 0x250   : > { %v1205_v32 = vpop.permute.xlu1 %1204 }
 0x251   : > { %v1207_v33 = vadd.f32 %v1205_v32, %v1201_v21 }
 0x253   : > { %1210 = vrot.lane.b32.xlu1 %v1207_v33, %s1717_s26 }
 0x254   : > { %v1256_v9 = vpop.permute.xlu1 %1255 }
 0x255   : > { %v1258_v5 = vadd.f32 %v1256_v9, %v1252_v22 }
 0x257   : > { %1261 = vrot.lane.b32.xlu1 %v1258_v5, %s1717_s26 }
 0x258   : > { %v1203_v34 = vpop.permute.xlu0 %1202  ;;  %v1308_v36 = vpop.permute.xlu1 %1307 }
 0x259   : > { %v1206_v35 = vadd.f32 %v1203_v34, %v1200_v8  ;;  %v1310_v37 = vadd.f32 %v1308_v36, %v1304_v27 }
 0x25b   : > { %1208 = vrot.lane.b32.xlu0 %v1206_v35, %s1717_s26  ;;  %1313 = vrot.lane.b32.xlu1 %v1310_v37, %s1717_s26 }
 0x25c   : > { %v1254_v38 = vpop.permute.xlu0 %1253  ;;  %v1360_v40 = vpop.permute.xlu1 %1359 }
 0x25d   : > { %v1257_v39 = vadd.f32 %v1254_v38, %v1251_v19  ;;  %v1362_v41 = vadd.f32 %v1360_v40, %v1356_v3 }
 0x25f   : > { %1259 = vrot.lane.b32.xlu0 %v1257_v39, %s1717_s26  ;;  %1365 = vrot.lane.b32.xlu1 %v1362_v41, %s1717_s26 }
 0x260   : > { %v1306_v10 = vpop.permute.xlu0 %1305 }
 0x261   : > { %v1309_v42 = vadd.f32 %v1306_v10, %v1303_v29 }
 0x263   : > { %1311 = vrot.lane.b32.xlu0 %v1309_v42, %s1717_s26 }
 0x264   : > { %v1358_v11 = vpop.permute.xlu0 %1357 }
 0x265   : > { %v1361_v43 = vadd.f32 %v1358_v11, %v1355_v31 }
 0x267   : > { %1363 = vrot.lane.b32.xlu0 %v1361_v43, %s1717_s26  ;;  %s2383_s26 = sld [smem:[#allocation6]] }
 0x26d   : > { %v1225_v63 = vstv %s2383_s26  ;;  %s1404_s26 = sshll.u32 %s2405_s30, 4  ;;  %s2431_s26 = int_to_ptr.vmem [resolvable:$true] %s1404_s26 }
 0x26e   : > { %s1640_s17 = scalar_lea.vmem %s2431_s26, 1024  ;;  %p1647_p8 = scmp.lt.s32.totalorder %s2431_s26, %s1645_s25 }
 0x26f   : > { %p1641_p10 = scmp.ne.s32.totalorder %s2431_s26, %s1640_s17 }
 0x271   : > { %p1642_p0 = pnand %p1641_p10, %p2500_p12 }
 0x273   : > { %p1643_p7 = pneg %p1642_p0 }
 0x2c5   : > { %v1211_v44 = vpop.permute.xlu1 %1210 }
 0x2c6   : > { %v1213_v45 = vadd.f32 %v1211_v44, %v1207_v33  ;;  %v1380_v33 = vstv %s2401_s29  ;;  %s1646_s29 = scalar_lea.vmem %s1645_s25, 2048 }
 0x2c7   : > { %p1648_p11 = scmp.lt.s32.totalorder %s1646_s29, %s1640_s17 }
 0x2c8   : > { %1216 = vrot.lane.b32.xlu1 %v1213_v45, %s1718_s27 }
 0x2c9   : > { %v1262_v46 = vpop.permute.xlu1 %1261  ;;  %p1649_p13 = por %p1648_p11, %p1647_p8 }
 0x2ca   : > { %v1264_v47 = vadd.f32 %v1262_v46, %v1258_v5 }
 0x2cb   : > { %p1650_p1 = pnand %p1649_p13, %p1643_p7 }
 0x2cc   : > { %1267 = vrot.lane.b32.xlu1 %v1264_v47, %s1718_s27 }
 0x2cd   : > { %v1209_v50 = vpop.permute.xlu0 %1208  ;;  %v1314_v6 = vpop.permute.xlu1 %1313 }
 0x2ce   : > { %v1212_v51 = vadd.f32 %v1209_v50, %v1206_v35  ;;  %v1316_v52 = vadd.f32 %v1314_v6, %v1310_v37 }
 0x2d0   : > { %1214 = vrot.lane.b32.xlu0 %v1212_v51, %s1718_s27  ;;  %1319 = vrot.lane.b32.xlu1 %v1316_v52, %s1718_s27 }
 0x2d1   : > { %v1260_v53 = vpop.permute.xlu0 %1259  ;;  %v1366_v61 = vpop.permute.xlu1 %1365 }
 0x2d2   : > { %v1263_v58 = vadd.f32 %v1260_v53, %v1257_v39  ;;  %v1368_v0 = vadd.f32 %v1366_v61, %v1362_v41 }
 0x2d4   : > { %1265 = vrot.lane.b32.xlu0 %v1263_v58, %s1718_s27  ;;  %1371 = vrot.lane.b32.xlu1 %v1368_v0, %s1718_s27 }
 0x2d5   : > { %v1312_v59 = vpop.permute.xlu0 %1311 }
 0x2d6   : > { %v1315_v60 = vadd.f32 %v1312_v59, %v1309_v42 }
 0x2d8   : > { %1317 = vrot.lane.b32.xlu0 %v1315_v60, %s1718_s27 }
 0x2d9   : > { %v1364_v49 = vpop.permute.xlu0 %1363 }
 0x2da   : > { %v2379_v55 = vadd.f32 %v1364_v49, %v1361_v43 }
 0x2dc   : > { %1369 = vrot.lane.b32.xlu0 %v2379_v55, %s1718_s27  ;;  %s2393_s27 = sld [smem:[#allocation6 + $0x2]] }
 0x2e2   : > { %v1328_v7 = vstv %s2393_s27  ;;  %s2437_s27 = scalar_lea.sflag [#allocation4], %s377_s21 }
 0x33a   : > { %v1217_v14 = vpop.permute.xlu1 %1216 }
 0x33b   : > { %v1219_v15 = vadd.f32 %v1217_v14, %v1213_v45 }
 0x33d   : > { %v1223_v12 = vmul.f32 %v1221_v62, %v1219_v15 }
 0x33e   : > { %v1268_v16 = vpop.permute.xlu1 %1267 }
 0x33f   : > { %v1227_v17 = vadd.f32 %v1225_v63, %v1223_v12  ;;  %v1270_v18 = vadd.f32 %v1268_v16, %v1264_v47 }
 0x341   : > { %v1229_v22 = vmax.f32 %v1227_v17, 0.0  ;;  %v1274_v23 = vmul.f32 %v1272_v13, %v1270_v18 }
 0x342   : > { %v1215_v21 = vpop.permute.xlu0 %1214  ;;  %v1320_v26 = vpop.permute.xlu1 %1319 }
 0x343   : > { %v1218_v24 = vadd.f32 %v1215_v21, %v1212_v51  ;;  %v1231_v27 = vmin.f32 %v1229_v22, 6.0  ;;  %v1278_v3 = vadd.f32 %v1276_v20, %v1274_v23  ;;  %v1322_v4 = vadd.f32 %v1320_v26, %v1316_v52 }
 0x345   : > { %v1222_v56 = vmul.f32 %v1221_v62, %v1218_v24  ;;  %1233 = vst.msk [vmem:[%s2405_s30 + $0x8] sm:$0xff] %vm431_vm1, %v1231_v27  ;;  %v1280_v54 = vmax.f32 %v1278_v3, 0.0  ;;  %v1326_v57 = vmul.f32 %v1324_v25, %v1322_v4 }
 0x346   : > { %v1266_v48 = vpop.permute.xlu0 %1265  ;;  %v1372_v2 = vpop.permute.xlu1 %1371 }
 0x347   : > { %v1226_v28 = vadd.f32 %v1225_v63, %v1222_v56  ;;  %v1269_v1 = vadd.f32 %v1266_v48, %v1263_v58  ;;  %v1282_v8 = vmin.f32 %v1280_v54, 6.0  ;;  %v1330_v19 = vadd.f32 %v1328_v7, %v1326_v57 }
 0x348   : > { %v1374_v29 = vadd.f32 %v1372_v2, %v1368_v0 }
 0x349   : > { %v1228_v31 = vmax.f32 %v1226_v28, 0.0  ;;  %v1273_v32 = vmul.f32 %v1272_v13, %v1269_v1  ;;  %1520 = vst.msk [vmem:[%s2405_s30 + $0x18] sm:$0xff] %vm431_vm1, %v1282_v8  ;;  %v1332_v5 = vmax.f32 %v1330_v19, 0.0 }
 0x34a   : > { %v1318_v9 = vpop.permute.xlu0 %1317  ;;  %v1378_v34 = vmul.f32 %v1376_v30, %v1374_v29 }
 0x34b   : > { %v1230_v35 = vmin.f32 %v1228_v31, 6.0  ;;  %v1277_v36 = vadd.f32 %v1276_v20, %v1273_v32  ;;  %v1321_v37 = vadd.f32 %v1318_v9, %v1315_v60  ;;  %v1334_v38 = vmin.f32 %v1332_v5, 6.0 }
 0x34c   : > { %v1382_v39 = vadd.f32 %v1380_v33, %v1378_v34 }
 0x34d   : > { %1232 = vst.msk [vmem:[%s2405_s30] sm:$0xff] %vm431_vm1, %v1230_v35  ;;  %v1279_v40 = vmax.f32 %v1277_v36, 0.0  ;;  %v1325_v41 = vmul.f32 %v1324_v25, %v1321_v37  ;;  %1525 = vst.msk [vmem:[%s2405_s30 + $0x28] sm:$0xff] %vm431_vm1, %v1334_v38 }
 0x34e   : > { %v1370_v10 = vpop.permute.xlu0 %1369  ;;  %v1384_v42 = vmax.f32 %v1382_v39, 0.0 }
 0x34f   : > { %v1281_v11 = vmin.f32 %v1279_v40, 6.0  ;;  %v1329_v43 = vadd.f32 %v1328_v7, %v1325_v41  ;;  %v1373_v44 = vadd.f32 %v1370_v10, %v2379_v55 }
 0x350   : > { %v1386_v45 = vmin.f32 %v1384_v42, 6.0 }
 0x351   : > { %1519 = vst.msk [vmem:[%s2405_s30 + $0x10] sm:$0xff] %vm431_vm1, %v1281_v11  ;;  %v1331_v46 = vmax.f32 %v1329_v43, 0.0  ;;  %v1377_v47 = vmul.f32 %v1376_v30, %v1373_v44 }
 0x352   : > { %1530 = vst.msk [vmem:[%s2405_s30 + $0x38] sm:$0xff] %vm431_vm1, %v1386_v45 }
 0x353   : > { %v1333_v50 = vmin.f32 %v1331_v46, 6.0  ;;  %v1381_v51 = vadd.f32 %v1380_v33, %v1377_v47 }
 0x355   : > { %1524 = vst.msk [vmem:[%s2405_s30 + $0x20] sm:$0xff] %vm431_vm1, %v1333_v50  ;;  %v1383_v6 = vmax.f32 %v1381_v51, 0.0 }
 0x357   : > { %v1385_v52 = vmin.f32 %v1383_v6, 6.0 }
 0x359   : > { %1529 = vst.msk [vmem:[%s2405_s30 + $0x30] sm:$0xff] %vm431_vm1, %v1385_v52 }
 0x35a   : > { %1653 = shalt.err (!%p1650_p1)
}
 0x35b   : > { %s1654_s21 = scalar_lea.hbm %s2429_s18, 1024  ;;  %s1658_s11 = scalar_lea.hbm %s2487_s10, 2048 }
 0x35c   : > { %p1655_p2 = scmp.ne.s32.totalorder %s2429_s18, %s1654_s21  ;;  %p1659_p9 = scmp.lt.s32.totalorder %s2429_s18, %s2487_s10 }
 0x35d   : > { %p1660_p5 = scmp.lt.s32.totalorder %s1658_s11, %s1654_s21 }
 0x35e   : > { %p1656_p3 = pnand %p1655_p2, %p2500_p12 }
 0x35f   : > { %p1661_p6 = por %p1660_p5, %p1659_p9 }
 0x360   : > { %p1657_p4 = pneg %p1656_p3 }
 0x362   : > { %p1662_p10 = pnand %p1661_p6, %p1657_p4 }
 0x364   : > { %1665 = shalt.err (!%p1662_p10)
}
 0x365   : > { %s1723_s17 = smov 128   ;;  %s1724_s25 = smov 8  }
 0x366   : > { %1546 = dma.vmem_to_hbm [thread:$0]  (%p2500_p12), %s2431_s26, 1024, %s2429_s18, %s2437_s27, %s1723_s17, %s1723_s17, %s1724_s25  }
 0x367 PF: > { %p1563_p0 = scmp.ge.s32.totalorder %s1708_s16, 2  ;;  %s1419_s29 = sand.u32 1, %s1696_s13  }
 0x368   : > { %p2501_p7 = scmp.ne.s32.totalorder %s2492_s24, 0  ;;  %s1420_s21 = scalar_lea.sflag [#allocation4], %s1419_s29 }
 0x36a   : > { %p1556_p8 = pnand %p1563_p0, %p2501_p7 }
 0x36c   : > { %p1557_p11 = pneg %p1556_p8 }
 0x36e   : > { %1691 = dma.done.wait (%p1557_p11), %s1420_s21, 1024  }
 0x36f   : > { %1693 = vsyncadd (%p1557_p11), %s1420_s21, 4294966272  ;;  %p22_p13 = scmp.ge.s32.totalorder %s1805_s19, 4   ;;  %s2502_s13 = smov %s1700_s14 }
 0x370   : > { %s2503_s14 = smov %s1704_s15  ;;  %s2504_s15 = smov %s1816_s22 }
 0x371   : > { %s2505_s16 = smov %s1805_s19  ;;  %24 = sbr.rel (!%p22_p13) target bundleno = 5 (0x5), region = 125 }
 0x376   :  { %1425 = vsyncpa [#allocation4], 1 }
 0x377   :  { %1427 = vsyncpa [#allocation4 + $0x1], 1 }
 0x378   :  { %1428 = vsyncpa [#allocation5], 1 }
 0x379   :  { %1430 = vsyncpa [#allocation5 + $0x1], 1 }
 0x37a   :  { %1431 = vsyncpa [#allocation7], 1 }

</bundles_post_ra>
